<compile_context>
chip_gen: v6e
topology: v6e:2x2x1
jax: 0.10.0
libtpu: 0.0.40
codegen_flags: <defaults>
</compile_context>

<pallas_src>
import jax
import jax.numpy as jnp
from jax.experimental import pallas as pl
from jax.experimental.pallas import tpu as pltpu

# Encoder widths: 256 -> 500 -> 500 -> 1000 -> 10
ENC_DIMS = [256, 500, 500, 1000, 10]
# Lane-dense padded widths (multiples of 128).
ENC_DIMS_PAD = [256, 512, 512, 1024, 128]
N_ENC = 4


def _round_up(n, m):
    return -(-n // m) * m


def _choose_tb(batch):
    """Adaptive batch tile.

    Small/medium batches (<= 512): one tile of round_up(B, 8) rows — minimal
    padding, minimal output writeback, single grid step.
    Large batches: 512-row tiles (multiple of 256 -> fills the 256-wide MXU on
    v6e/v7x, and guarantees >= 2 grid steps so the "parallel" batch axis can
    shard across v7x's two TensorCores).
    """
    if batch <= 512:
        return _round_up(max(batch, 8), 8)
    return 512


def _encoder_kernel(x_ref, w1_ref, w2_ref, w3_ref, w4_ref,
                    b1_ref, b2_ref, b3_ref, b4_ref, latent_ref):
    """Fused encoder: 3x (Linear + ReLU) + final Linear -> latent."""
    w_refs = (w1_ref, w2_ref, w3_ref, w4_ref)
    b_refs = (b1_ref, b2_ref, b3_ref, b4_ref)

    h = x_ref[...]  # (tb, 256) bf16 — already cast in the wrapper
    for i in range(3):
        # bf16 MXU operands, f32 accumulation; bias add + ReLU in f32 (VPU).
        y = jnp.dot(h, w_refs[i][...], preferred_element_type=jnp.float32)
        y = jnp.maximum(y + b_refs[i][...], 0.0)
        h = y.astype(jnp.bfloat16)

    latent = jnp.dot(h, w_refs[3][...], preferred_element_type=jnp.float32)
    latent_ref[...] = latent + b_refs[3][...]
    # Note: the decoder branch of the original module is intentionally not
    # computed — forward() discards it and returns only `latent`.


def prepare_params(weights_t, biases):
    """One-time (out of the hot path) pad + bf16 cast of the encoder params.

    weights_t[k]: (ENC_DIMS[k], ENC_DIMS[k+1]) f32 (pre-transposed).
    biases[k]:    (ENC_DIMS[k+1],) f32.
    Returns lane-dense padded bf16 weights and f32 bias rows (1, out_pad).
    """
    w_pads, b_pads = [], []
    for k in range(N_ENC):
        din, dout = ENC_DIMS[k], ENC_DIMS[k + 1]
        dinp, doutp = ENC_DIMS_PAD[k], ENC_DIMS_PAD[k + 1]
        w = jnp.pad(weights_t[k], ((0, dinp - din), (0, doutp - dout)))
        w_pads.append(w.astype(jnp.bfloat16))
        b = jnp.pad(biases[k].reshape(1, dout), ((0, 0), (0, doutp - dout)))
        b_pads.append(b.astype(jnp.float32))
    return w_pads, b_pads


@jax.jit
def auto_encoder_forward(x, w_pads, b_pads):
    """x: (B, 256).  w_pads / b_pads: output of prepare_params().
    Returns latent (B, 10) f32."""
    B, F = x.shape
    assert F == ENC_DIMS[0]

    tb = _choose_tb(B)                 # static under jit (derived from x.shape)
    n_tiles = -(-B // tb)
    B_pad = n_tiles * tb

    x_bf16 = x.astype(jnp.bfloat16)
    if B_pad != B:                     # skip the pad when already tile-aligned
        x_bf16 = jnp.pad(x_bf16, ((0, B_pad - B), (0, 0)))

    in_specs = [pl.BlockSpec((tb, ENC_DIMS_PAD[0]), lambda i: (i, 0))]
    # Full (untiled) weight blocks — resident in VMEM across all grid steps.
    for k in range(N_ENC):
        in_specs.append(
            pl.BlockSpec((ENC_DIMS_PAD[k], ENC_DIMS_PAD[k + 1]), lambda i: (0, 0)))
    # Bias rows, (1, out_pad) — broadcast over the batch tile.
    for k in range(N_ENC):
        in_specs.append(pl.BlockSpec((1, ENC_DIMS_PAD[k + 1]), lambda i: (0, 0)))

    out_spec = pl.BlockSpec((tb, ENC_DIMS_PAD[4]), lambda i: (i, 0))
    out_shape = jax.ShapeDtypeStruct((B_pad, ENC_DIMS_PAD[4]), jnp.float32)

    latent_pad = pl.pallas_call(
        _encoder_kernel,
        grid=(n_tiles,),
        in_specs=in_specs,
        out_specs=out_spec,
        out_shape=out_shape,
        compiler_params=pltpu.CompilerParams(
            dimension_semantics=("parallel",),
        ),
    )(x_bf16, *w_pads, *b_pads)

    # Slice away the batch padding and the 10 -> 128 lane padding.
    return latent_pad[:B, :ENC_DIMS[4]]


def init_params(key):
    """nn.Linear-style init U(-1/sqrt(in), 1/sqrt(in)); weights stored as (in, out)."""
    weights_t, biases = [], []
    for k in range(N_ENC):
        din, dout = ENC_DIMS[k], ENC_DIMS[k + 1]
        key, kw, kb = jax.random.split(key, 3)
        bound = 1.0 / (din ** 0.5)
        weights_t.append(jax.random.uniform(kw, (din, dout), jnp.float32, -bound, bound))
        biases.append(jax.random.uniform(kb, (dout,), jnp.float32, -bound, bound))
    return weights_t, biases


def _reference_latent(x, weights_t, biases):
    """Plain-JAX encoder using the same bf16-operand / f32-accumulate math."""
    h = x.astype(jnp.bfloat16)
    for i in range(3):
        y = jnp.dot(h, weights_t[i].astype(jnp.bfloat16),
                    preferred_element_type=jnp.float32) + biases[i]
        h = jnp.maximum(y, 0.0).astype(jnp.bfloat16)
    return jnp.dot(h, weights_t[3].astype(jnp.bfloat16),
                   preferred_element_type=jnp.float32) + biases[3]


if __name__ == "__main__":
    key = jax.random.PRNGKey(0)
    weights_t, biases = init_params(key)
    w_pads, b_pads = prepare_params(weights_t, biases)  # once, out of hot path

    ok = True
    for B in (8, 130):  # tiny batch (single 8-row tile) + non-aligned batch (pad path)
        key, kx = jax.random.split(key)
        x = jax.random.normal(kx, (B, 256), dtype=jnp.float32)

        latent = auto_encoder_forward(x, w_pads, b_pads)
        latent = jax.block_until_ready(latent)

        ref_latent = _reference_latent(x, weights_t, biases)

        ok &= latent.shape == (B, 10)
        ok &= bool(jnp.allclose(latent, ref_latent, atol=5e-3, rtol=5e-3))

    assert ok
    print("KERNEL_OK")
</pallas_src>

<mosaic_0001>
module attributes {stable_mosaic.version = 11 : i64} {
  func.func @_encoder_kernel(%arg0: i32, %arg1: memref<8x256xbf16, #tpu.memory_space<vmem>>, %arg2: memref<256x512xbf16, #tpu.memory_space<vmem>>, %arg3: memref<512x512xbf16, #tpu.memory_space<vmem>>, %arg4: memref<512x1024xbf16, #tpu.memory_space<vmem>>, %arg5: memref<1024x128xbf16, #tpu.memory_space<vmem>>, %arg6: memref<1x512xf32, #tpu.memory_space<vmem>>, %arg7: memref<1x512xf32, #tpu.memory_space<vmem>>, %arg8: memref<1x1024xf32, #tpu.memory_space<vmem>>, %arg9: memref<1x128xf32, #tpu.memory_space<vmem>>, %arg10: memref<8x128xf32, #tpu.memory_space<vmem>>) attributes {dimension_semantics = [#tpu.dimension_semantics<parallel>], iteration_bounds = array<i64: 1>, scalar_prefetch = 0 : i64, scratch_operands = 0 : i64, tpu.core_type = #tpu.core_type<tc>, window_params = [{transform_indices = @transform_0, window_bounds = array<i64: 8, 256>}, {pipeline_mode = #tpu.pipeline_mode<synchronous>, transform_indices = @transform_1, window_bounds = array<i64: 256, 512>}, {pipeline_mode = #tpu.pipeline_mode<synchronous>, transform_indices = @transform_2, window_bounds = array<i64: 512, 512>}, {pipeline_mode = #tpu.pipeline_mode<synchronous>, transform_indices = @transform_3, window_bounds = array<i64: 512, 1024>}, {pipeline_mode = #tpu.pipeline_mode<synchronous>, transform_indices = @transform_4, window_bounds = array<i64: 1024, 128>}, {pipeline_mode = #tpu.pipeline_mode<synchronous>, transform_indices = @transform_5, window_bounds = array<i64: 1, 512>}, {pipeline_mode = #tpu.pipeline_mode<synchronous>, transform_indices = @transform_6, window_bounds = array<i64: 1, 512>}, {pipeline_mode = #tpu.pipeline_mode<synchronous>, transform_indices = @transform_7, window_bounds = array<i64: 1, 1024>}, {pipeline_mode = #tpu.pipeline_mode<synchronous>, transform_indices = @transform_8, window_bounds = array<i64: 1, 128>}, {transform_indices = @transform_9, window_bounds = array<i64: 8, 128>}]} {
    %c0 = arith.constant 0 : index
    %c0_0 = arith.constant 0 : index
    %0 = vector.load %arg1[%c0, %c0_0] : memref<8x256xbf16, #tpu.memory_space<vmem>>, vector<8x256xbf16>
    %c0_1 = arith.constant 0 : index
    %c0_2 = arith.constant 0 : index
    %1 = vector.load %arg2[%c0_1, %c0_2] : memref<256x512xbf16, #tpu.memory_space<vmem>>, vector<256x512xbf16>
    %cst = arith.constant dense<0.000000e+00> : vector<8x512xf32>
    %2 = tpu.matmul %0, %1, %cst {dimension_numbers = #tpu.dot_dimension_numbers<[1], [0], [0], [1], [0, 0, 1, 1], [], []>} : vector<8x256xbf16>, vector<256x512xbf16>, vector<8x512xf32> -> vector<8x512xf32>
    %c0_3 = arith.constant 0 : index
    %c0_4 = arith.constant 0 : index
    %3 = vector.load %arg6[%c0_3, %c0_4] : memref<1x512xf32, #tpu.memory_space<vmem>>, vector<1x512xf32>
    %4 = vector.broadcast %3 : vector<1x512xf32> to vector<8x512xf32>
    %5 = arith.addf %2, %4 : vector<8x512xf32>
    %cst_5 = arith.constant 0.000000e+00 : f32
    %6 = vector.broadcast %cst_5 : f32 to vector<8x512xf32>
    %7 = arith.maximumf %5, %6 : vector<8x512xf32>
    %8 = arith.truncf %7 : vector<8x512xf32> to vector<8x512xbf16>
    %c0_6 = arith.constant 0 : index
    %c0_7 = arith.constant 0 : index
    %9 = vector.load %arg3[%c0_6, %c0_7] : memref<512x512xbf16, #tpu.memory_space<vmem>>, vector<512x512xbf16>
    %cst_8 = arith.constant dense<0.000000e+00> : vector<8x512xf32>
    %10 = tpu.matmul %8, %9, %cst_8 {dimension_numbers = #tpu.dot_dimension_numbers<[1], [0], [0], [1], [0, 0, 1, 1], [], []>} : vector<8x512xbf16>, vector<512x512xbf16>, vector<8x512xf32> -> vector<8x512xf32>
    %c0_9 = arith.constant 0 : index
    %c0_10 = arith.constant 0 : index
    %11 = vector.load %arg7[%c0_9, %c0_10] : memref<1x512xf32, #tpu.memory_space<vmem>>, vector<1x512xf32>
    %12 = vector.broadcast %11 : vector<1x512xf32> to vector<8x512xf32>
    %13 = arith.addf %10, %12 : vector<8x512xf32>
    %cst_11 = arith.constant 0.000000e+00 : f32
    %14 = vector.broadcast %cst_11 : f32 to vector<8x512xf32>
    %15 = arith.maximumf %13, %14 : vector<8x512xf32>
    %16 = arith.truncf %15 : vector<8x512xf32> to vector<8x512xbf16>
    %c0_12 = arith.constant 0 : index
    %c0_13 = arith.constant 0 : index
    %17 = vector.load %arg4[%c0_12, %c0_13] : memref<512x1024xbf16, #tpu.memory_space<vmem>>, vector<512x1024xbf16>
    %cst_14 = arith.constant dense<0.000000e+00> : vector<8x1024xf32>
    %18 = tpu.matmul %16, %17, %cst_14 {dimension_numbers = #tpu.dot_dimension_numbers<[1], [0], [0], [1], [0, 0, 1, 1], [], []>} : vector<8x512xbf16>, vector<512x1024xbf16>, vector<8x1024xf32> -> vector<8x1024xf32>
    %c0_15 = arith.constant 0 : index
    %c0_16 = arith.constant 0 : index
    %19 = vector.load %arg8[%c0_15, %c0_16] : memref<1x1024xf32, #tpu.memory_space<vmem>>, vector<1x1024xf32>
    %20 = vector.broadcast %19 : vector<1x1024xf32> to vector<8x1024xf32>
    %21 = arith.addf %18, %20 : vector<8x1024xf32>
    %cst_17 = arith.constant 0.000000e+00 : f32
    %22 = vector.broadcast %cst_17 : f32 to vector<8x1024xf32>
    %23 = arith.maximumf %21, %22 : vector<8x1024xf32>
    %24 = arith.truncf %23 : vector<8x1024xf32> to vector<8x1024xbf16>
    %c0_18 = arith.constant 0 : index
    %c0_19 = arith.constant 0 : index
    %25 = vector.load %arg5[%c0_18, %c0_19] : memref<1024x128xbf16, #tpu.memory_space<vmem>>, vector<1024x128xbf16>
    %cst_20 = arith.constant dense<0.000000e+00> : vector<8x128xf32>
    %26 = tpu.matmul %24, %25, %cst_20 {dimension_numbers = #tpu.dot_dimension_numbers<[1], [0], [0], [1], [0, 0, 1, 1], [], []>} : vector<8x1024xbf16>, vector<1024x128xbf16>, vector<8x128xf32> -> vector<8x128xf32>
    %c0_21 = arith.constant 0 : index
    %c0_22 = arith.constant 0 : index
    %27 = vector.load %arg9[%c0_21, %c0_22] : memref<1x128xf32, #tpu.memory_space<vmem>>, vector<1x128xf32>
    %28 = vector.broadcast %27 : vector<1x128xf32> to vector<8x128xf32>
    %29 = arith.addf %26, %28 : vector<8x128xf32>
    %c0_23 = arith.constant 0 : index
    %c0_24 = arith.constant 0 : index
    %30 = vector.load %arg10[%c0_23, %c0_24] : memref<8x128xf32, #tpu.memory_space<vmem>>, vector<8x128xf32>
    tpu.vector_store %arg10[%c0_23, %c0_24], %29 {strides = array<i32>} : memref<8x128xf32, #tpu.memory_space<vmem>>, vector<8x128xf32>,
    return
  }
  func.func @transform_0(%arg0: i32) -> (i32, i32) {
    %c0_i32 = arith.constant 0 : i32
    %c0_i32_0 = arith.constant 0 : i32
    return %arg0, %c0_i32 : i32, i32
  }
  func.func @transform_1(%arg0: i32) -> (i32, i32) {
    %c0_i32 = arith.constant 0 : i32
    %c0_i32_0 = arith.constant 0 : i32
    %c0_i32_1 = arith.constant 0 : i32
    return %c0_i32, %c0_i32_0 : i32, i32
  }
  func.func @transform_2(%arg0: i32) -> (i32, i32) {
    %c0_i32 = arith.constant 0 : i32
    %c0_i32_0 = arith.constant 0 : i32
    %c0_i32_1 = arith.constant 0 : i32
    return %c0_i32, %c0_i32_0 : i32, i32
  }
  func.func @transform_3(%arg0: i32) -> (i32, i32) {
    %c0_i32 = arith.constant 0 : i32
    %c0_i32_0 = arith.constant 0 : i32
    %c0_i32_1 = arith.constant 0 : i32
    return %c0_i32, %c0_i32_0 : i32, i32
  }
  func.func @transform_4(%arg0: i32) -> (i32, i32) {
    %c0_i32 = arith.constant 0 : i32
    %c0_i32_0 = arith.constant 0 : i32
    %c0_i32_1 = arith.constant 0 : i32
    return %c0_i32, %c0_i32_0 : i32, i32
  }
  func.func @transform_5(%arg0: i32) -> (i32, i32) {
    %c0_i32 = arith.constant 0 : i32
    %c0_i32_0 = arith.constant 0 : i32
    %c0_i32_1 = arith.constant 0 : i32
    return %c0_i32, %c0_i32_0 : i32, i32
  }
  func.func @transform_6(%arg0: i32) -> (i32, i32) {
    %c0_i32 = arith.constant 0 : i32
    %c0_i32_0 = arith.constant 0 : i32
    %c0_i32_1 = arith.constant 0 : i32
    return %c0_i32, %c0_i32_0 : i32, i32
  }
  func.func @transform_7(%arg0: i32) -> (i32, i32) {
    %c0_i32 = arith.constant 0 : i32
    %c0_i32_0 = arith.constant 0 : i32
    %c0_i32_1 = arith.constant 0 : i32
    return %c0_i32, %c0_i32_0 : i32, i32
  }
  func.func @transform_8(%arg0: i32) -> (i32, i32) {
    %c0_i32 = arith.constant 0 : i32
    %c0_i32_0 = arith.constant 0 : i32
    %c0_i32_1 = arith.constant 0 : i32
    return %c0_i32, %c0_i32_0 : i32, i32
  }
  func.func @transform_9(%arg0: i32) -> (i32, i32) {
    %c0_i32 = arith.constant 0 : i32
    %c0_i32_0 = arith.constant 0 : i32
    return %arg0, %c0_i32 : i32, i32
  }
}

</mosaic_0001>

<bundles_post_ra>
// kernel: auto_encoder_forward.1
= control target key start
LH: loop header
LB: loop body
LE: loop exit
PB: predicated region body
PF: predicated region fallthrough
CT: control target
= control target key end

     0   :  { %14 = vsyncpa [#allocation3], 0  ;;  %s5453_s0 = inlined_call_operand.vmem [shape: bf16[8,256], index: 0, kind: input, shape index: {}]   ;;  %s5454_s1 = inlined_call_operand.hbm [shape: bf16[256,512], index: 1, kind: input, shape index: {}]   ;;  %s5455_s2 = inlined_call_operand.hbm [shape: bf16[512,512], index: 2, kind: input, shape index: {}]   ;;  %s5456_s3 = inlined_call_operand.hbm [shape: bf16[512,1024], index: 3, kind: input, shape index: {}]   ;;  %s5457_s4 = inlined_call_operand.hbm [shape: bf16[1024,128], index: 4, kind: input, shape index: {}]   ;;  %s5458_s5 = inlined_call_operand.vmem [shape: f32[1,512], index: 5, kind: input, shape index: {}]   ;;  %s5459_s6 = inlined_call_operand.vmem [shape: f32[1,512], index: 6, kind: input, shape index: {}]   ;;  %s5460_s7 = inlined_call_operand.vmem [shape: f32[1,1024], index: 7, kind: input, shape index: {}]   ;;  %s5461_s8 = inlined_call_operand.vmem [shape: f32[1,128], index: 8, kind: input, shape index: {}]   ;;  %s5462_s9 = inlined_call_operand.hbm [shape: f32[8,128], index: 9, kind: output, shape index: {}]  }
   0x1   :  { %15 = vsyncpa [#allocation6], 0 }
   0x2   :  { %16 = vsyncpa [#allocation9], 0 }
   0x3   :  { %17 = vsyncpa [#allocation4], 0  ;;  %s5250_s30 = smov [#allocation5]   ;;  %s5251_s11 = smov [#allocation2]  }
   0x4   :  { %s37_s10 = sshll.u32 %s5250_s30, 4  ;;  %s25_s12 = sshll.u32 %s5251_s11, 4  ;;  %s38_s10 = int_to_ptr.vmem [resolvable:$true] %s37_s10  ;;  %s26_s12 = int_to_ptr.vmem [resolvable:$true] %s25_s12 }
   0x5   :  { %s5150_s13 = scalar_lea.vmem %s38_s10, 16384  ;;  %p5155_p1 = scmp.lt.s32.totalorder %s38_s10, %s38_s10 }
   0x6   :  { %p5151_p0 = scmp.ne.s32.totalorder %s38_s10, %s5150_s13  ;;  %p5156_p2 = scmp.lt.s32.totalorder %s5150_s13, %s5150_s13 }
   0x8   :  { %p5157_p3 = por %p5156_p2, %p5155_p1 }
   0xa   :  { %p5158_p4 = pnand %p5157_p3, %p5151_p0 }
   0xc   :  { %5161 = shalt.err (!%p5158_p4)
}
   0xd   :  { %s5252_s14 = smov 256   ;;  %s5253_s15 = smov 16  }
   0xe   :  { %43 = dma.hbm_to_vmem [thread:$0]  %s5455_s2, 16384, %s38_s10, [#allocation6], %s5252_s14, %s5252_s14, %s5253_s15  }
   0xf   :  { %s5170_s18 = scalar_lea.vmem %s26_s12, 8192  ;;  %p5175_p6 = scmp.lt.s32.totalorder %s26_s12, %s26_s12 }
  0x10   :  { %p5171_p5 = scmp.ne.s32.totalorder %s26_s12, %s5170_s18  ;;  %p5176_p7 = scmp.lt.s32.totalorder %s5170_s18, %s5170_s18 }
  0x12   :  { %p5177_p8 = por %p5176_p7, %p5175_p6 }
  0x14   :  { %p5178_p9 = pnand %p5177_p8, %p5171_p5 }
  0x16   :  { %5181 = shalt.err (!%p5178_p9)
}
  0x17   :  { %31 = dma.hbm_to_vmem [thread:$0]  %s5454_s1, 8192, %s26_s12, [#allocation3], %s5252_s14, %s5252_s14, %s5253_s15  }
  0x18   :  { %s5254_s21 = smov [#allocation7]  }
  0x19   :  { %s49_s22 = sshll.u32 %s5254_s21, 4  ;;  %s50_s22 = int_to_ptr.vmem [resolvable:$true] %s49_s22 }
  0x1a   :  { %s5190_s23 = scalar_lea.vmem %s50_s22, 32768  ;;  %p5195_p11 = scmp.lt.s32.totalorder %s50_s22, %s50_s22 }
  0x1b   :  { %p5191_p10 = scmp.ne.s32.totalorder %s50_s22, %s5190_s23  ;;  %p5196_p12 = scmp.lt.s32.totalorder %s5190_s23, %s5190_s23 }
  0x1d   :  { %p5197_p13 = por %p5196_p12, %p5195_p11 }
  0x1f   :  { %p5198_p0 = pnand %p5197_p13, %p5191_p10 }
  0x21   :  { %5201 = shalt.err (!%p5198_p0)
}
  0x22   :  { %s5255_s2 = smov 512   ;;  %s5256_s24 = smov 32  }
  0x23   :  { %55 = dma.hbm_to_vmem [thread:$0]  %s5456_s3, 32768, %s50_s22, [#allocation6], %s5255_s2, %s5255_s2, %s5256_s24  }
  0x24   :  { %s5257_s27 = smov [#allocation8]  }
  0x25   :  { %s61_s28 = sshll.u32 %s5257_s27, 4  ;;  %s62_s28 = int_to_ptr.vmem [resolvable:$true] %s61_s28 }
  0x26   :  { %s5210_s1 = scalar_lea.vmem %s62_s28, 8192  ;;  %p5215_p2 = scmp.lt.s32.totalorder %s62_s28, %s62_s28 }
  0x27   :  { %p5211_p1 = scmp.ne.s32.totalorder %s62_s28, %s5210_s1  ;;  %p5216_p3 = scmp.lt.s32.totalorder %s5210_s1, %s5210_s1 }
  0x29   :  { %p5217_p4 = por %p5216_p3, %p5215_p2 }
  0x2b   :  { %p5218_p5 = pnand %p5217_p4, %p5211_p1 }
  0x2d   :  { %5221 = shalt.err (!%p5218_p5)
}
  0x2e   :  { %s5258_s29 = smov 64   ;;  %s5259_s30 = smov 4  }
  0x2f   :  { %67 = dma.hbm_to_vmem [thread:$0]  %s5457_s4, 8192, %s62_s28, [#allocation9], %s5258_s29, %s5258_s29, %s5259_s30  }
  0x30   :  { %5242 = dma.done.wait [#allocation3], 8192  }
  0x31   :  { %5243 = vsyncadd [#allocation3], 4294959104 }
  0x32   :  { %5244 = dma.done.wait [#allocation6], 49152  }
  0x33   :  { %5245 = vsyncadd [#allocation6], 4294918144 }
  0x34   :  { %5246 = dma.done.wait [#allocation9], 8192  }
  0x35   :  { %5247 = vsyncadd [#allocation9], 4294959104  ;;  %v4788_v0 = vld [vmem:[#allocation2 + $0xe4] ss:$16 sps:$4 sm:$0xff]   ;;  %v4790_v1 = vld [vmem:[#allocation2 + $0xec] ss:$16 sps:$4 sm:$0xff]  }
  0x36   :  { %503 = vmatprep.subr.bf16.mxu0 %v4788_v0  ;;  %v4792_v2 = vld [vmem:[#allocation2 + $0xe0] ss:$16 sps:$4 sm:$0xff]   ;;  %v4793_v3 = vld [vmem:[#allocation2 + $0xe8] ss:$16 sps:$4 sm:$0xff]   ;;  %544 = vmatprep.subr.bf16.mxu1 %v4790_v1  ;;  %v4794_v4 = vld [vmem:[#allocation2 + $0xc4] ss:$16 sps:$4 sm:$0xff]  }
  0x37   :  { %504 = vmatpush1.bf16.msra.mxu0 %v4792_v2  ;;  %545 = vmatpush1.bf16.msra.mxu1 %v4793_v3  ;;  %v4796_v5 = vld [vmem:[#allocation2 + $0xcc] ss:$16 sps:$4 sm:$0xff]   ;;  %v4798_v6 = vld [vmem:[#allocation2 + $0xc0] ss:$16 sps:$4 sm:$0xff]   ;;  %v4799_v7 = vld [vmem:[#allocation2 + $0xc8] ss:$16 sps:$4 sm:$0xff]  }
  0x38   :  { %505 = vmatprep.subr.bf16.mxu0 %v4794_v4  ;;  %546 = vmatprep.subr.bf16.mxu1 %v4796_v5  ;;  %v4800_v8 = vld [vmem:[#allocation2 + $0xa4] ss:$16 sps:$4 sm:$0xff]   ;;  %v4802_v9 = vld [vmem:[#allocation2 + $0xac] ss:$16 sps:$4 sm:$0xff]   ;;  %v4804_v10 = vld [vmem:[#allocation2 + $0xa0] ss:$16 sps:$4 sm:$0xff]  }
  0x39   :  { %v4805_v11 = vld [vmem:[#allocation2 + $0xa8] ss:$16 sps:$4 sm:$0xff]   ;;  %v4806_v12 = vld [vmem:[#allocation2 + $0x84] ss:$16 sps:$4 sm:$0xff]   ;;  %v4808_v13 = vld [vmem:[#allocation2 + $0x8c] ss:$16 sps:$4 sm:$0xff]  }
  0x3a   :  { %v4810_v14 = vld [vmem:[#allocation2 + $0x80] ss:$16 sps:$4 sm:$0xff]   ;;  %v4811_v15 = vld [vmem:[#allocation2 + $0x88] ss:$16 sps:$4 sm:$0xff]   ;;  %v4812_v16 = vld [vmem:[#allocation2 + $0x64] ss:$16 sps:$4 sm:$0xff]  }
  0x3b   :  { %506 = vmatpush1.bf16.msra.mxu0 %v4798_v6  ;;  %547 = vmatpush1.bf16.msra.mxu1 %v4799_v7  ;;  %v4814_v17 = vld [vmem:[#allocation2 + $0x6c] ss:$16 sps:$4 sm:$0xff]   ;;  %v4816_v18 = vld [vmem:[#allocation2 + $0x60] ss:$16 sps:$4 sm:$0xff]   ;;  %v4817_v19 = vld [vmem:[#allocation2 + $0x68] ss:$16 sps:$4 sm:$0xff]  }
  0x3c   :  { %507 = vmatprep.subr.bf16.mxu0 %v4800_v8  ;;  %548 = vmatprep.subr.bf16.mxu1 %v4802_v9  ;;  %v4818_v20 = vld [vmem:[#allocation2 + $0x44] ss:$16 sps:$4 sm:$0xff]   ;;  %v4820_v21 = vld [vmem:[#allocation2 + $0x4c] ss:$16 sps:$4 sm:$0xff]   ;;  %v4822_v22 = vld [vmem:[#allocation2 + $0x40] ss:$16 sps:$4 sm:$0xff]  }
  0x3d   :  { %v4823_v23 = vld [vmem:[#allocation2 + $0x48] ss:$16 sps:$4 sm:$0xff]   ;;  %v4824_v24 = vld [vmem:[#allocation2 + $0x24] ss:$16 sps:$4 sm:$0xff]   ;;  %v4826_v25 = vld [vmem:[#allocation2 + $0x2c] ss:$16 sps:$4 sm:$0xff]  }
  0x3e   :  { %v4828_v26 = vld [vmem:[#allocation2 + $0x20] ss:$16 sps:$4 sm:$0xff]   ;;  %v4829_v27 = vld [vmem:[#allocation2 + $0x28] ss:$16 sps:$4 sm:$0xff]   ;;  %v4830_v28 = vld [vmem:[#allocation2 + $0x4] ss:$16 sps:$4 sm:$0xff]  }
  0x3f   :  { %508 = vmatpush1.bf16.msra.mxu0 %v4804_v10  ;;  %549 = vmatpush1.bf16.msra.mxu1 %v4805_v11  ;;  %v4832_v29 = vld [vmem:[#allocation2 + $0xc] ss:$16 sps:$4 sm:$0xff]   ;;  %v4834_v30 = vld [vmem:[#allocation2] ss:$16 sps:$4 sm:$0xff]   ;;  %v4835_v31 = vld [vmem:[#allocation2 + $0x8] ss:$16 sps:$4 sm:$0xff]  }
  0x40   :  { %509 = vmatprep.subr.bf16.mxu0 %v4806_v12  ;;  %550 = vmatprep.subr.bf16.mxu1 %v4808_v13  ;;  %v4836_v32 = vld [vmem:[#allocation2 + $0x1e4] ss:$16 sps:$4 sm:$0xff]   ;;  %v4838_v33 = vld [vmem:[#allocation2 + $0x1ec] ss:$16 sps:$4 sm:$0xff]   ;;  %v4840_v34 = vld [vmem:[#allocation2 + $0x1e0] ss:$16 sps:$4 sm:$0xff]  }
  0x41   :  { %v4841_v35 = vld [vmem:[#allocation2 + $0x1e8] ss:$16 sps:$4 sm:$0xff]   ;;  %v4842_v36 = vld [vmem:[#allocation2 + $0x1c4] ss:$16 sps:$4 sm:$0xff]   ;;  %v4844_v37 = vld [vmem:[#allocation2 + $0x1cc] ss:$16 sps:$4 sm:$0xff]  }
  0x42   :  { %v4846_v38 = vld [vmem:[#allocation2 + $0x1c0] ss:$16 sps:$4 sm:$0xff]   ;;  %v4847_v39 = vld [vmem:[#allocation2 + $0x1c8] ss:$16 sps:$4 sm:$0xff]   ;;  %v4848_v40 = vld [vmem:[#allocation2 + $0x1a4] ss:$16 sps:$4 sm:$0xff]  }
  0x43   :  { %510 = vmatpush1.bf16.msra.mxu0 %v4810_v14  ;;  %551 = vmatpush1.bf16.msra.mxu1 %v4811_v15  ;;  %v4850_v41 = vld [vmem:[#allocation2 + $0x1ac] ss:$16 sps:$4 sm:$0xff]   ;;  %v4852_v42 = vld [vmem:[#allocation2 + $0x1a0] ss:$16 sps:$4 sm:$0xff]   ;;  %v4853_v43 = vld [vmem:[#allocation2 + $0x1a8] ss:$16 sps:$4 sm:$0xff]  }
  0x44   :  { %511 = vmatprep.subr.bf16.mxu0 %v4812_v16  ;;  %552 = vmatprep.subr.bf16.mxu1 %v4814_v17  ;;  %v4854_v44 = vld [vmem:[#allocation2 + $0x184] ss:$16 sps:$4 sm:$0xff]   ;;  %v4856_v45 = vld [vmem:[#allocation2 + $0x18c] ss:$16 sps:$4 sm:$0xff]   ;;  %v4858_v47 = vld [vmem:[#allocation2 + $0x180] ss:$16 sps:$4 sm:$0xff]  }
  0x45   :  { %v89_v46 = vld [vmem:[%s5453_s0] sm:$0xff]  ;;  %v4859_v49 = vld [vmem:[#allocation2 + $0x188] ss:$16 sps:$4 sm:$0xff]   ;;  %v4862_v51 = vld [vmem:[#allocation2 + $0x16c] ss:$16 sps:$4 sm:$0xff]   ;;  %s5260_s16 = smov [#allocation10]  }
  0x46   :  { %v4175_v48 = vcombine.high %v89_v46, %v89_v46  ;;  %v4860_v50 = vld [vmem:[#allocation2 + $0x164] ss:$16 sps:$4 sm:$0xff]   ;;  %v4864_v52 = vld [vmem:[#allocation2 + $0x160] ss:$16 sps:$4 sm:$0xff]   ;;  %v4865_v53 = vld [vmem:[#allocation2 + $0x168] ss:$16 sps:$4 sm:$0xff]   ;;  %v4174_v4 = vcombine.low %v89_v46, %v89_v46 }
  0x47   :  { %512 = vmatpush1.bf16.msra.mxu0 %v4816_v18  ;;  %553 = vmatpush1.bf16.msra.mxu1 %v4817_v19  ;;  %v4866_v54 = vld [vmem:[#allocation2 + $0x144] ss:$16 sps:$4 sm:$0xff]   ;;  %v4868_v55 = vld [vmem:[#allocation2 + $0x14c] ss:$16 sps:$4 sm:$0xff]   ;;  %v4870_v56 = vld [vmem:[#allocation2 + $0x140] ss:$16 sps:$4 sm:$0xff]  }
  0x48   :  { %513 = vmatprep.subr.bf16.mxu0 %v4818_v20  ;;  %554 = vmatprep.subr.bf16.mxu1 %v4820_v21  ;;  %v4871_v57 = vld [vmem:[#allocation2 + $0x148] ss:$16 sps:$4 sm:$0xff]   ;;  %v4872_v58 = vld [vmem:[#allocation2 + $0x124] ss:$16 sps:$4 sm:$0xff]   ;;  %v4874_v59 = vld [vmem:[#allocation2 + $0x12c] ss:$16 sps:$4 sm:$0xff]  }
  0x49   :  { %535 = vmatprep.mubr.bf16.mxu0 %v4175_v48  ;;  %576 = vmatprep.mubr.bf16.mxu1 %v4175_v48  ;;  %v4876_v60 = vld [vmem:[#allocation2 + $0x120] ss:$16 sps:$4 sm:$0xff]   ;;  %v4877_v61 = vld [vmem:[#allocation2 + $0x128] ss:$16 sps:$4 sm:$0xff]   ;;  %v4878_v62 = vld [vmem:[#allocation2 + $0x104] ss:$16 sps:$4 sm:$0xff]  }
  0x4a   :  { %v4880_v63 = vld [vmem:[#allocation2 + $0x10c] ss:$16 sps:$4 sm:$0xff]   ;;  %v4882_v0 = vld [vmem:[#allocation2 + $0x100] ss:$16 sps:$4 sm:$0xff]   ;;  %v4883_v1 = vld [vmem:[#allocation2 + $0x108] ss:$16 sps:$4 sm:$0xff]  }
  0x4b   :  { %514 = vmatpush1.bf16.msra.mxu0 %v4822_v22  ;;  %555 = vmatpush1.bf16.msra.mxu1 %v4823_v23  ;;  %v4888_v2 = vld [vmem:[#allocation5 + $0xe4] ss:$16 sps:$4 sm:$0xff]   ;;  %v4886_v5 = vld [vmem:[#allocation5 + $0xe0] ss:$16 sps:$4 sm:$0xff]   ;;  %s4163_s17 = sshll.u32 %s5260_s16, 4  ;;  %s4164_s17 = int_to_ptr.vmem [resolvable:$true] %s4163_s17 }
  0x4c   :  { %515 = vmatprep.subr.bf16.mxu0 %v4824_v24  ;;  %556 = vmatprep.subr.bf16.mxu1 %v4826_v25  ;;  %v4891_v3 = vld [vmem:[#allocation5 + $0x2e4] ss:$16 sps:$4 sm:$0xff]   ;;  %v4889_v6 = vld [vmem:[#allocation5 + $0x2e0] ss:$16 sps:$4 sm:$0xff]   ;;  %p5227_p7 = scmp.lt.s32.totalorder %s4164_s17, %s4164_s17 }
  0x4d   :  { %v4894_v7 = vld [vmem:[#allocation5 + $0xc4] ss:$16 sps:$4 sm:$0xff]   ;;  %v4892_v9 = vld [vmem:[#allocation5 + $0xc0] ss:$16 sps:$4 sm:$0xff]  }
  0x4e   :  { %v4897_v8 = vld [vmem:[#allocation5 + $0x2c4] ss:$16 sps:$4 sm:$0xff]   ;;  %v4895_v10 = vld [vmem:[#allocation5 + $0x2c0] ss:$16 sps:$4 sm:$0xff]  }
  0x4f   :  { %516 = vmatpush1.bf16.msra.mxu0 %v4828_v26  ;;  %557 = vmatpush1.bf16.msra.mxu1 %v4829_v27  ;;  %v4900_v11 = vld [vmem:[#allocation5 + $0xa4] ss:$16 sps:$4 sm:$0xff]   ;;  %v4898_v13 = vld [vmem:[#allocation5 + $0xa0] ss:$16 sps:$4 sm:$0xff]  }
  0x50   :  { %517 = vmatprep.subr.bf16.mxu0 %v4830_v28  ;;  %558 = vmatprep.subr.bf16.mxu1 %v4832_v29  ;;  %v4903_v12 = vld [vmem:[#allocation5 + $0x2a4] ss:$16 sps:$4 sm:$0xff]   ;;  %v4901_v14 = vld [vmem:[#allocation5 + $0x2a0] ss:$16 sps:$4 sm:$0xff]  }
  0x51   :  { %v4906_v15 = vld [vmem:[#allocation5 + $0x84] ss:$16 sps:$4 sm:$0xff]   ;;  %v4904_v17 = vld [vmem:[#allocation5 + $0x80] ss:$16 sps:$4 sm:$0xff]  }
  0x52   :  { %v4909_v16 = vld [vmem:[#allocation5 + $0x284] ss:$16 sps:$4 sm:$0xff]   ;;  %v4907_v18 = vld [vmem:[#allocation5 + $0x280] ss:$16 sps:$4 sm:$0xff]  }
  0x53   :  { %518 = vmatpush1.bf16.msra.mxu0 %v4834_v30  ;;  %559 = vmatpush1.bf16.msra.mxu1 %v4835_v31  ;;  %v4912_v19 = vld [vmem:[#allocation5 + $0x64] ss:$16 sps:$4 sm:$0xff]   ;;  %v4910_v21 = vld [vmem:[#allocation5 + $0x60] ss:$16 sps:$4 sm:$0xff]  }
  0x54   :  { %519 = vmatprep.subr.bf16.mxu0 %v4836_v32  ;;  %560 = vmatprep.subr.bf16.mxu1 %v4838_v33  ;;  %v4915_v20 = vld [vmem:[#allocation5 + $0x264] ss:$16 sps:$4 sm:$0xff]   ;;  %v4913_v22 = vld [vmem:[#allocation5 + $0x260] ss:$16 sps:$4 sm:$0xff]  }
  0x55   :  { %v4918_v23 = vld [vmem:[#allocation5 + $0x44] ss:$16 sps:$4 sm:$0xff]   ;;  %v4916_v25 = vld [vmem:[#allocation5 + $0x40] ss:$16 sps:$4 sm:$0xff]  }
  0x56   :  { %v4921_v24 = vld [vmem:[#allocation5 + $0x244] ss:$16 sps:$4 sm:$0xff]   ;;  %v4919_v26 = vld [vmem:[#allocation5 + $0x240] ss:$16 sps:$4 sm:$0xff]  }
  0x57   :  { %520 = vmatpush2.bf16.msra.mxu0 %v4840_v34  ;;  %561 = vmatpush2.bf16.msra.mxu1 %v4841_v35  ;;  %v4924_v27 = vld [vmem:[#allocation5 + $0x24] ss:$16 sps:$4 sm:$0xff]   ;;  %v4922_v29 = vld [vmem:[#allocation5 + $0x20] ss:$16 sps:$4 sm:$0xff]  }
  0x58   :  { %521 = vmatprep.subr.bf16.mxu0 %v4842_v36  ;;  %562 = vmatprep.subr.bf16.mxu1 %v4844_v37  ;;  %v4927_v28 = vld [vmem:[#allocation5 + $0x224] ss:$16 sps:$4 sm:$0xff]   ;;  %v4925_v30 = vld [vmem:[#allocation5 + $0x220] ss:$16 sps:$4 sm:$0xff]  }
  0x59   :  { %v4930_v31 = vld [vmem:[#allocation5 + $0x4] ss:$16 sps:$4 sm:$0xff]   ;;  %v4928_v33 = vld [vmem:[#allocation5] ss:$16 sps:$4 sm:$0xff]  }
  0x5a   :  { %v4933_v32 = vld [vmem:[#allocation5 + $0x204] ss:$16 sps:$4 sm:$0xff]   ;;  %v4931_v34 = vld [vmem:[#allocation5 + $0x200] ss:$16 sps:$4 sm:$0xff]  }
  0x5b   :  { %522 = vmatpush2.bf16.msra.mxu0 %v4846_v38  ;;  %563 = vmatpush2.bf16.msra.mxu1 %v4847_v39  ;;  %v4936_v35 = vld [vmem:[#allocation5 + $0x1e4] ss:$16 sps:$4 sm:$0xff]   ;;  %v4934_v37 = vld [vmem:[#allocation5 + $0x1e0] ss:$16 sps:$4 sm:$0xff]  }
  0x5c   :  { %523 = vmatprep.subr.bf16.mxu0 %v4848_v40  ;;  %564 = vmatprep.subr.bf16.mxu1 %v4850_v41  ;;  %v4939_v36 = vld [vmem:[#allocation5 + $0x3e4] ss:$16 sps:$4 sm:$0xff]   ;;  %v4937_v38 = vld [vmem:[#allocation5 + $0x3e0] ss:$16 sps:$4 sm:$0xff]  }
  0x5d   :  { %v4942_v39 = vld [vmem:[#allocation5 + $0x1c4] ss:$16 sps:$4 sm:$0xff]   ;;  %v4940_v41 = vld [vmem:[#allocation5 + $0x1c0] ss:$16 sps:$4 sm:$0xff]  }
  0x5e   :  { %v4945_v40 = vld [vmem:[#allocation5 + $0x3c4] ss:$16 sps:$4 sm:$0xff]   ;;  %v4949_v46 = vld [vmem:[#allocation5 + $0x3a0] ss:$16 sps:$4 sm:$0xff]  }
  0x5f   :  { %524 = vmatpush2.bf16.msra.mxu0 %v4852_v42  ;;  %565 = vmatpush2.bf16.msra.mxu1 %v4853_v43  ;;  %v4943_v42 = vld [vmem:[#allocation5 + $0x3c0] ss:$16 sps:$4 sm:$0xff]   ;;  %v4948_v43 = vld [vmem:[#allocation5 + $0x1a4] ss:$16 sps:$4 sm:$0xff]  }
  0x60   :  { %525 = vmatprep.subr.bf16.mxu0 %v4854_v44  ;;  %566 = vmatprep.subr.bf16.mxu1 %v4856_v45  ;;  %v4951_v44 = vld [vmem:[#allocation5 + $0x3a4] ss:$16 sps:$4 sm:$0xff]   ;;  %v4946_v45 = vld [vmem:[#allocation5 + $0x1a0] ss:$16 sps:$4 sm:$0xff]  }
  0x61   :  { %v4957_v48 = vld [vmem:[#allocation5 + $0x384] ss:$16 sps:$4 sm:$0xff]  }
  0x63   :  { %526 = vmatpush2.bf16.msra.mxu0 %v4858_v47  ;;  %567 = vmatpush2.bf16.msra.mxu1 %v4859_v49  ;;  %v4954_v47 = vld [vmem:[#allocation5 + $0x184] ss:$16 sps:$4 sm:$0xff]   ;;  %v4952_v49 = vld [vmem:[#allocation5 + $0x180] ss:$16 sps:$4 sm:$0xff]  }
  0x64   :  { %527 = vmatprep.subr.bf16.mxu0 %v4860_v50  ;;  %568 = vmatprep.subr.bf16.mxu1 %v4862_v51  ;;  %v4955_v50 = vld [vmem:[#allocation5 + $0x380] ss:$16 sps:$4 sm:$0xff]   ;;  %v4960_v51 = vld [vmem:[#allocation5 + $0x164] ss:$16 sps:$4 sm:$0xff]  }
  0x67   :  { %528 = vmatpush2.bf16.msra.mxu0 %v4864_v52  ;;  %569 = vmatpush2.bf16.msra.mxu1 %v4865_v53  ;;  %v4963_v52 = vld [vmem:[#allocation5 + $0x364] ss:$16 sps:$4 sm:$0xff]   ;;  %v4958_v53 = vld [vmem:[#allocation5 + $0x160] ss:$16 sps:$4 sm:$0xff]  }
  0x68   :  { %529 = vmatprep.subr.bf16.mxu0 %v4866_v54  ;;  %570 = vmatprep.subr.bf16.mxu1 %v4868_v55  ;;  %v4961_v54 = vld [vmem:[#allocation5 + $0x360] ss:$16 sps:$4 sm:$0xff]   ;;  %v4966_v55 = vld [vmem:[#allocation5 + $0x144] ss:$16 sps:$4 sm:$0xff]  }
  0x6b   :  { %530 = vmatpush2.bf16.msra.mxu0 %v4870_v56  ;;  %571 = vmatpush2.bf16.msra.mxu1 %v4871_v57  ;;  %v4969_v56 = vld [vmem:[#allocation5 + $0x344] ss:$16 sps:$4 sm:$0xff]   ;;  %v4964_v57 = vld [vmem:[#allocation5 + $0x140] ss:$16 sps:$4 sm:$0xff]  }
  0x6c   :  { %531 = vmatprep.subr.bf16.mxu0 %v4872_v58  ;;  %572 = vmatprep.subr.bf16.mxu1 %v4874_v59  ;;  %v4967_v58 = vld [vmem:[#allocation5 + $0x340] ss:$16 sps:$4 sm:$0xff]   ;;  %v4972_v59 = vld [vmem:[#allocation5 + $0x124] ss:$16 sps:$4 sm:$0xff]  }
  0x6f   :  { %532 = vmatpush2.bf16.msra.mxu0 %v4876_v60  ;;  %573 = vmatpush2.bf16.msra.mxu1 %v4877_v61  ;;  %v4975_v60 = vld [vmem:[#allocation5 + $0x324] ss:$16 sps:$4 sm:$0xff]   ;;  %v4970_v61 = vld [vmem:[#allocation5 + $0x120] ss:$16 sps:$4 sm:$0xff]  }
  0x70   :  { %533 = vmatprep.subr.bf16.mxu0 %v4878_v62  ;;  %574 = vmatprep.subr.bf16.mxu1 %v4880_v63  ;;  %v4973_v62 = vld [vmem:[#allocation5 + $0x320] ss:$16 sps:$4 sm:$0xff]   ;;  %v4978_v63 = vld [vmem:[#allocation5 + $0x104] ss:$16 sps:$4 sm:$0xff]  }
  0x73   :  { %534 = vmatpush2.bf16.msra.mxu0 %v4882_v0  ;;  %575 = vmatpush2.bf16.msra.mxu1 %v4883_v1  ;;  %v4981_v0 = vld [vmem:[#allocation5 + $0x304] ss:$16 sps:$4 sm:$0xff]   ;;  %v4976_v1 = vld [vmem:[#allocation5 + $0x100] ss:$16 sps:$4 sm:$0xff]  }
  0x74   :  { %1383 = vmatprep.subr.bf16.mxu0 %v4888_v2  ;;  %1424 = vmatprep.subr.bf16.mxu1 %v4891_v3  ;;  %v4979_v2 = vld [vmem:[#allocation5 + $0x300] ss:$16 sps:$4 sm:$0xff]   ;;  %v4984_v3 = vld [vmem:[#allocation5 + $0xec] ss:$16 sps:$4 sm:$0xff]  }
  0x76   :  { %536 = vmatmul.mubr.bf16.vlgmr.msra.gmra.mxu0 %v4174_v4  ;;  %577 = vmatmul.mubr.bf16.vlgmr.msra.gmra.mxu1 %v4174_v4  ;;  %v4987_v4 = vld [vmem:[#allocation5 + $0x2ec] ss:$16 sps:$4 sm:$0xff]  }
  0x77   :  { %1384 = vmatpush1.bf16.msra.mxu0 %v4886_v5  ;;  %1425 = vmatpush1.bf16.msra.mxu1 %v4889_v6  ;;  %v156_v5 = vlaneseq }
  0x78   :  { %1385 = vmatprep.subr.bf16.mxu0 %v4894_v7  ;;  %1426 = vmatprep.subr.bf16.mxu1 %v4897_v8 }
  0x79   :  { %v5326_v6 = vshrl.u32 %v156_v5, 7  ;;  %v5033_v5 = vld [vmem:[#allocation5 + $0x3e8] ss:$16 sps:$4 sm:$0xff]  }
  0x7b   :  { %1386 = vmatpush1.bf16.msra.mxu0 %v4892_v9  ;;  %1427 = vmatpush1.bf16.msra.mxu1 %v4895_v10  ;;  %v5329_v7 = vsub.s32 0, %v5326_v6  ;;  %v5332_v8 = vsub.s32 2, %v5326_v6  ;;  %v154_v9 = vld [vmem:[%s5458_s5] sm:$0xf]  ;;  %v5338_v10 = vsub.s32 1, %v5326_v6 }
  0x7c   :  { %1387 = vmatprep.subr.bf16.mxu0 %v4900_v11  ;;  %1428 = vmatprep.subr.bf16.mxu1 %v4903_v12  ;;  %v5341_v11 = vsub.s32 3, %v5326_v6 }
  0x7d   :  { %v159_v12 = vrot.slane %v154_v9, %v5329_v7 }
  0x7f   :  { %1388 = vmatpush1.bf16.msra.mxu0 %v4898_v13  ;;  %1429 = vmatpush1.bf16.msra.mxu1 %v4901_v14  ;;  %v167_v13 = vrot.slane %v154_v9, %v5332_v8  ;;  %v163_v14 = vrot.slane %v154_v9, %v5338_v10 }
  0x80   :  { %1389 = vmatprep.subr.bf16.mxu0 %v4906_v15  ;;  %1430 = vmatprep.subr.bf16.mxu1 %v4909_v16  ;;  %v171_v15 = vrot.slane %v154_v9, %v5341_v11  ;;  %v5038_v9 = vld [vmem:[#allocation5 + $0x1cc] ss:$16 sps:$4 sm:$0xff]  }
  0x83   :  { %1390 = vmatpush1.bf16.msra.mxu0 %v4904_v17  ;;  %1431 = vmatpush1.bf16.msra.mxu1 %v4907_v18 }
  0x84   :  { %1391 = vmatprep.subr.bf16.mxu0 %v4912_v19  ;;  %1432 = vmatprep.subr.bf16.mxu1 %v4915_v20 }
  0x87   :  { %1392 = vmatpush1.bf16.msra.mxu0 %v4910_v21  ;;  %1433 = vmatpush1.bf16.msra.mxu1 %v4913_v22 }
  0x88   :  { %1393 = vmatprep.subr.bf16.mxu0 %v4918_v23  ;;  %1434 = vmatprep.subr.bf16.mxu1 %v4921_v24 }
  0x8b   :  { %1394 = vmatpush1.bf16.msra.mxu0 %v4916_v25  ;;  %1435 = vmatpush1.bf16.msra.mxu1 %v4919_v26 }
  0x8c   :  { %1395 = vmatprep.subr.bf16.mxu0 %v4924_v27  ;;  %1436 = vmatprep.subr.bf16.mxu1 %v4927_v28 }
  0x8f   :  { %1396 = vmatpush1.bf16.msra.mxu0 %v4922_v29  ;;  %1437 = vmatpush1.bf16.msra.mxu1 %v4925_v30 }
  0x90   :  { %1397 = vmatprep.subr.bf16.mxu0 %v4930_v31  ;;  %1438 = vmatprep.subr.bf16.mxu1 %v4933_v32 }
  0x93   :  { %1398 = vmatpush1.bf16.msra.mxu0 %v4928_v33  ;;  %1439 = vmatpush1.bf16.msra.mxu1 %v4931_v34 }
  0x94   :  { %1399 = vmatprep.subr.bf16.mxu0 %v4936_v35  ;;  %1440 = vmatprep.subr.bf16.mxu1 %v4939_v36  ;;  %v4982_v35 = vld [vmem:[#allocation5 + $0xe8] ss:$16 sps:$4 sm:$0xff]  }
  0x95   :  { %v4985_v36 = vld [vmem:[#allocation5 + $0x2e8] ss:$16 sps:$4 sm:$0xff]  }
  0x97   :  { %1400 = vmatpush2.bf16.msra.mxu0 %v4934_v37  ;;  %1441 = vmatpush2.bf16.msra.mxu1 %v4937_v38  ;;  %v4990_v38 = vld [vmem:[#allocation5 + $0xcc] ss:$16 sps:$4 sm:$0xff]  }
  0x98   :  { %1401 = vmatprep.subr.bf16.mxu0 %v4942_v39  ;;  %1442 = vmatprep.subr.bf16.mxu1 %v4945_v40  ;;  %v4993_v39 = vld [vmem:[#allocation5 + $0x2cc] ss:$16 sps:$4 sm:$0xff]   ;;  %v4988_v40 = vld [vmem:[#allocation5 + $0xc8] ss:$16 sps:$4 sm:$0xff]  }
  0x9b   :  { %1402 = vmatpush2.bf16.msra.mxu0 %v4940_v41  ;;  %1443 = vmatpush2.bf16.msra.mxu1 %v4943_v42  ;;  %v4991_v41 = vld [vmem:[#allocation5 + $0x2c8] ss:$16 sps:$4 sm:$0xff]   ;;  %v4996_v42 = vld [vmem:[#allocation5 + $0xac] ss:$16 sps:$4 sm:$0xff]  }
  0x9c   :  { %1403 = vmatprep.subr.bf16.mxu0 %v4948_v43  ;;  %1444 = vmatprep.subr.bf16.mxu1 %v4951_v44  ;;  %v4999_v43 = vld [vmem:[#allocation5 + $0x2ac] ss:$16 sps:$4 sm:$0xff]   ;;  %v4994_v44 = vld [vmem:[#allocation5 + $0xa8] ss:$16 sps:$4 sm:$0xff]  }
  0x9f   :  { %1404 = vmatpush2.bf16.msra.mxu0 %v4946_v45  ;;  %1445 = vmatpush2.bf16.msra.mxu1 %v4949_v46  ;;  %v4997_v45 = vld [vmem:[#allocation5 + $0x2a8] ss:$16 sps:$4 sm:$0xff]   ;;  %v5002_v46 = vld [vmem:[#allocation5 + $0x8c] ss:$16 sps:$4 sm:$0xff]  }
  0xa0   :  { %1405 = vmatprep.subr.bf16.mxu0 %v4954_v47  ;;  %1446 = vmatprep.subr.bf16.mxu1 %v4957_v48  ;;  %v5005_v47 = vld [vmem:[#allocation5 + $0x28c] ss:$16 sps:$4 sm:$0xff]   ;;  %v5000_v48 = vld [vmem:[#allocation5 + $0x88] ss:$16 sps:$4 sm:$0xff]  }
  0xa3   :  { %1406 = vmatpush2.bf16.msra.mxu0 %v4952_v49  ;;  %1447 = vmatpush2.bf16.msra.mxu1 %v4955_v50  ;;  %v5003_v49 = vld [vmem:[#allocation5 + $0x288] ss:$16 sps:$4 sm:$0xff]   ;;  %v5008_v50 = vld [vmem:[#allocation5 + $0x6c] ss:$16 sps:$4 sm:$0xff]  }
  0xa4   :  { %1407 = vmatprep.subr.bf16.mxu0 %v4960_v51  ;;  %1448 = vmatprep.subr.bf16.mxu1 %v4963_v52  ;;  %v5011_v51 = vld [vmem:[#allocation5 + $0x26c] ss:$16 sps:$4 sm:$0xff]   ;;  %v5006_v52 = vld [vmem:[#allocation5 + $0x68] ss:$16 sps:$4 sm:$0xff]  }
  0xa7   :  { %1408 = vmatpush2.bf16.msra.mxu0 %v4958_v53  ;;  %1449 = vmatpush2.bf16.msra.mxu1 %v4961_v54  ;;  %v5009_v53 = vld [vmem:[#allocation5 + $0x268] ss:$16 sps:$4 sm:$0xff]   ;;  %v5014_v54 = vld [vmem:[#allocation5 + $0x4c] ss:$16 sps:$4 sm:$0xff]  }
  0xa8   :  { %1409 = vmatprep.subr.bf16.mxu0 %v4966_v55  ;;  %1450 = vmatprep.subr.bf16.mxu1 %v4969_v56  ;;  %v5017_v55 = vld [vmem:[#allocation5 + $0x24c] ss:$16 sps:$4 sm:$0xff]   ;;  %v5012_v56 = vld [vmem:[#allocation5 + $0x48] ss:$16 sps:$4 sm:$0xff]  }
  0xab   :  { %1410 = vmatpush2.bf16.msra.mxu0 %v4964_v57  ;;  %1451 = vmatpush2.bf16.msra.mxu1 %v4967_v58  ;;  %v5015_v57 = vld [vmem:[#allocation5 + $0x248] ss:$16 sps:$4 sm:$0xff]   ;;  %v5020_v58 = vld [vmem:[#allocation5 + $0x2c] ss:$16 sps:$4 sm:$0xff]  }
  0xac   :  { %1411 = vmatprep.subr.bf16.mxu0 %v4972_v59  ;;  %1452 = vmatprep.subr.bf16.mxu1 %v4975_v60  ;;  %v5023_v59 = vld [vmem:[#allocation5 + $0x22c] ss:$16 sps:$4 sm:$0xff]   ;;  %v5018_v60 = vld [vmem:[#allocation5 + $0x28] ss:$16 sps:$4 sm:$0xff]  }
  0xaf   :  { %1412 = vmatpush2.bf16.msra.mxu0 %v4970_v61  ;;  %1453 = vmatpush2.bf16.msra.mxu1 %v4973_v62  ;;  %v5021_v61 = vld [vmem:[#allocation5 + $0x228] ss:$16 sps:$4 sm:$0xff]   ;;  %v5026_v62 = vld [vmem:[#allocation5 + $0xc] ss:$16 sps:$4 sm:$0xff]  }
  0xb0   :  { %1413 = vmatprep.subr.bf16.mxu0 %v4978_v63  ;;  %1454 = vmatprep.subr.bf16.mxu1 %v4981_v0  ;;  %v5029_v63 = vld [vmem:[#allocation5 + $0x20c] ss:$16 sps:$4 sm:$0xff]   ;;  %v5024_v0 = vld [vmem:[#allocation5 + $0x8] ss:$16 sps:$4 sm:$0xff]  }
  0xb3   :  { %1414 = vmatpush2.bf16.msra.mxu0 %v4976_v1  ;;  %1455 = vmatpush2.bf16.msra.mxu1 %v4979_v2  ;;  %v5027_v1 = vld [vmem:[#allocation5 + $0x208] ss:$16 sps:$4 sm:$0xff]   ;;  %v5032_v2 = vld [vmem:[#allocation5 + $0x1ec] ss:$16 sps:$4 sm:$0xff]  }
  0xb4   :  { %1465 = vmatprep.subr.bf16.mxu0 %v4984_v3  ;;  %1506 = vmatprep.subr.bf16.mxu1 %v4987_v4  ;;  %v5035_v3 = vld [vmem:[#allocation5 + $0x3ec] ss:$16 sps:$4 sm:$0xff]   ;;  %v5030_v4 = vld [vmem:[#allocation5 + $0x1e8] ss:$16 sps:$4 sm:$0xff]  }
 0x136   :  { %v537_v16 = vpop.f32.mrf.mxu0  ;;  %v578_v17 = vpop.f32.mrf.mxu1 }
 0x137   :  { %v538_v18 = vadd.f32 %v537_v16, %v159_v12  ;;  %v579_v19 = vadd.f32 %v578_v17, %v167_v13  ;;  %v5041_v12 = vld [vmem:[#allocation5 + $0x3cc] ss:$16 sps:$4 sm:$0xff]   ;;  %v5036_v13 = vld [vmem:[#allocation5 + $0x1c8] ss:$16 sps:$4 sm:$0xff]  }
 0x138   :  { %v539_v20 = vpop.f32.mrf.mxu0  ;;  %v580_v21 = vpop.f32.mrf.mxu1  ;;  %v5047_v16 = vld [vmem:[#allocation5 + $0x3ac] ss:$16 sps:$4 sm:$0xff]   ;;  %v5042_v17 = vld [vmem:[#allocation5 + $0x1a8] ss:$16 sps:$4 sm:$0xff]  }
 0x139   :  { %v587_v22 = vmax.f32 %v579_v19, 0.0  ;;  %v540_v23 = vadd.f32 %v539_v20, %v163_v14  ;;  %v581_v24 = vadd.f32 %v580_v21, %v171_v15  ;;  %v585_v25 = vmax.f32 %v538_v18, 0.0  ;;  %v5039_v14 = vld [vmem:[#allocation5 + $0x3c8] ss:$16 sps:$4 sm:$0xff]   ;;  %v5044_v15 = vld [vmem:[#allocation5 + $0x1ac] ss:$16 sps:$4 sm:$0xff]  }
 0x13a   :  { %v541_v26 = vpop.f32.mrf.mxu0  ;;  %v582_v27 = vpop.f32.mrf.mxu1  ;;  %v5045_v18 = vld [vmem:[#allocation5 + $0x3a8] ss:$16 sps:$4 sm:$0xff]   ;;  %v5050_v19 = vld [vmem:[#allocation5 + $0x18c] ss:$16 sps:$4 sm:$0xff]  }
 0x13b   :  { %v586_v28 = vmax.f32 %v540_v23, 0.0  ;;  %v588_v29 = vmax.f32 %v581_v24, 0.0  ;;  %v5347_v30 = vpack.c.bf16 %v587_v22, %v587_v22  ;;  %v5349_v37 = vpack.c.bf16 %v585_v25, %v585_v25  ;;  %v5053_v20 = vld [vmem:[#allocation5 + $0x38c] ss:$16 sps:$4 sm:$0xff]   ;;  %v5048_v21 = vld [vmem:[#allocation5 + $0x188] ss:$16 sps:$4 sm:$0xff]  }
 0x13c   :  { %v542_v31 = vpop.f32.mrf.mxu0  ;;  %v583_v32 = vpop.f32.mrf.mxu1  ;;  %v5051_v22 = vld [vmem:[#allocation5 + $0x388] ss:$16 sps:$4 sm:$0xff]   ;;  %v5056_v23 = vld [vmem:[#allocation5 + $0x16c] ss:$16 sps:$4 sm:$0xff]  }
 0x13d   :  { %v590_v33 = vpack.c.bf16 %v586_v28, %v586_v28  ;;  %v592_v34 = vpack.c.bf16 %v588_v29, %v588_v29  ;;  %v5059_v24 = vld [vmem:[#allocation5 + $0x36c] ss:$16 sps:$4 sm:$0xff]   ;;  %v5054_v25 = vld [vmem:[#allocation5 + $0x168] ss:$16 sps:$4 sm:$0xff]  }
 0x13e   :  { %v5057_v26 = vld [vmem:[#allocation5 + $0x368] ss:$16 sps:$4 sm:$0xff]   ;;  %v5062_v27 = vld [vmem:[#allocation5 + $0x14c] ss:$16 sps:$4 sm:$0xff]  }
 0x13f   :  { %1415 = vmatprep.mubr.bf16.mxu0 %v590_v33  ;;  %1456 = vmatprep.mubr.bf16.mxu1 %v592_v34  ;;  %v5065_v28 = vld [vmem:[#allocation5 + $0x34c] ss:$16 sps:$4 sm:$0xff]   ;;  %v5060_v29 = vld [vmem:[#allocation5 + $0x148] ss:$16 sps:$4 sm:$0xff]  }
 0x140   :  { %1416 = vmatmul.mubr.bf16.vlgmr.msra.gmra.mxu0 %v5349_v37  ;;  %1457 = vmatmul.mubr.bf16.vlgmr.msra.gmra.mxu1 %v5347_v30  ;;  %v5063_v31 = vld [vmem:[#allocation5 + $0x348] ss:$16 sps:$4 sm:$0xff]   ;;  %v5068_v32 = vld [vmem:[#allocation5 + $0x12c] ss:$16 sps:$4 sm:$0xff]  }
 0x141   :  { %1466 = vmatpush1.bf16.msra.mxu0 %v4982_v35  ;;  %1507 = vmatpush1.bf16.msra.mxu1 %v4985_v36  ;;  %v5069_v35 = vld [vmem:[#allocation5 + $0x328] ss:$16 sps:$4 sm:$0xff]   ;;  %v5074_v36 = vld [vmem:[#allocation5 + $0x10c] ss:$16 sps:$4 sm:$0xff]  }
 0x142   :  { %1497 = vmatprep.mubr.bf16.mxu0 %v590_v33  ;;  %1538 = vmatprep.mubr.bf16.mxu1 %v592_v34  ;;  %v5071_v33 = vld [vmem:[#allocation5 + $0x32c] ss:$16 sps:$4 sm:$0xff]   ;;  %v5066_v34 = vld [vmem:[#allocation5 + $0x128] ss:$16 sps:$4 sm:$0xff]  }
 0x143   :  { %1467 = vmatprep.subr.bf16.mxu0 %v4990_v38  ;;  %1508 = vmatprep.subr.bf16.mxu1 %v4993_v39  ;;  %v5077_v38 = vld [vmem:[#allocation5 + $0x30c] ss:$16 sps:$4 sm:$0xff]   ;;  %v1611_v39 = vld [vmem:[#allocation7 + $0x1c0] sm:$0xff] }
 0x145   :  { %1468 = vmatpush1.bf16.msra.mxu0 %v4988_v40  ;;  %1509 = vmatpush1.bf16.msra.mxu1 %v4991_v41  ;;  %v1615_v40 = vld [vmem:[#allocation7 + $0x1e0] sm:$0xff]  ;;  %v5072_v41 = vld [vmem:[#allocation5 + $0x108] ss:$16 sps:$4 sm:$0xff]  }
 0x146   :  { %1469 = vmatprep.subr.bf16.mxu0 %v4996_v42  ;;  %1510 = vmatprep.subr.bf16.mxu1 %v4999_v43  ;;  %v5075_v42 = vld [vmem:[#allocation5 + $0x308] ss:$16 sps:$4 sm:$0xff]   ;;  %v4425_v43 = vcombine.high %v1611_v39, %v1615_v40 }
 0x149   :  { %1470 = vmatpush1.bf16.msra.mxu0 %v4994_v44  ;;  %1511 = vmatpush1.bf16.msra.mxu1 %v4997_v45  ;;  %v1603_v44 = vld [vmem:[#allocation7 + $0x180] sm:$0xff] }
 0x14a   :  { %1471 = vmatprep.subr.bf16.mxu0 %v5002_v46  ;;  %1512 = vmatprep.subr.bf16.mxu1 %v5005_v47  ;;  %v1607_v45 = vld [vmem:[#allocation7 + $0x1a0] sm:$0xff]  ;;  %v4424_v46 = vcombine.low %v1611_v39, %v1615_v40 }
 0x14b   :  { %v4417_v47 = vcombine.high %v1603_v44, %v1607_v45  ;;  %v1667_v40 = vld [vmem:[#allocation7 + $0x380] sm:$0xff] }
 0x14d   :  { %1472 = vmatpush1.bf16.msra.mxu0 %v5000_v48  ;;  %1513 = vmatpush1.bf16.msra.mxu1 %v5003_v49  ;;  %v1595_v48 = vld [vmem:[#allocation7 + $0x140] sm:$0xff] }
 0x14e   :  { %1473 = vmatprep.subr.bf16.mxu0 %v5008_v50  ;;  %1514 = vmatprep.subr.bf16.mxu1 %v5011_v51  ;;  %v1599_v49 = vld [vmem:[#allocation7 + $0x160] sm:$0xff]  ;;  %v4416_v50 = vcombine.low %v1603_v44, %v1607_v45 }
 0x14f   :  { %v4409_v51 = vcombine.high %v1595_v48, %v1599_v49 }
 0x151   :  { %1474 = vmatpush1.bf16.msra.mxu0 %v5006_v52  ;;  %1515 = vmatpush1.bf16.msra.mxu1 %v5009_v53  ;;  %v1587_v52 = vld [vmem:[#allocation7 + $0x100] sm:$0xff] }
 0x152   :  { %1475 = vmatprep.subr.bf16.mxu0 %v5014_v54  ;;  %1516 = vmatprep.subr.bf16.mxu1 %v5017_v55  ;;  %v1591_v53 = vld [vmem:[#allocation7 + $0x120] sm:$0xff]  ;;  %v4408_v54 = vcombine.low %v1595_v48, %v1599_v49 }
 0x153   :  { %v4401_v55 = vcombine.high %v1587_v52, %v1591_v53  ;;  %v1659_v48 = vld [vmem:[#allocation7 + $0x340] sm:$0xff] }
 0x154   :  { %v1663_v49 = vld [vmem:[#allocation7 + $0x360] sm:$0xff] }
 0x155   :  { %1476 = vmatpush1.bf16.msra.mxu0 %v5012_v56  ;;  %1517 = vmatpush1.bf16.msra.mxu1 %v5015_v57  ;;  %v1579_v56 = vld [vmem:[#allocation7 + $0xc0] sm:$0xff] }
 0x156   :  { %1477 = vmatprep.subr.bf16.mxu0 %v5020_v58  ;;  %1518 = vmatprep.subr.bf16.mxu1 %v5023_v59  ;;  %v1583_v57 = vld [vmem:[#allocation7 + $0xe0] sm:$0xff] }
 0x157   :  { %v1739_v58 = vld [vmem:[#allocation7 + $0x5c0] sm:$0xff] }
 0x158   :  { %v1743_v59 = vld [vmem:[#allocation7 + $0x5e0] sm:$0xff] }
 0x159   :  { %1478 = vmatpush1.bf16.msra.mxu0 %v5018_v60  ;;  %1519 = vmatpush1.bf16.msra.mxu1 %v5021_v61  ;;  %v4400_v60 = vcombine.low %v1587_v52, %v1591_v53  ;;  %v4552_v61 = vcombine.low %v1739_v58, %v1743_v59 }
 0x15a   :  { %1479 = vmatprep.subr.bf16.mxu0 %v5026_v62  ;;  %1520 = vmatprep.subr.bf16.mxu1 %v5029_v63  ;;  %v5355_v62 = vld [vmem:[#allocation7 + $0x1c8] sm:$0xff]  ;;  %v4393_v63 = vcombine.high %v1579_v56, %v1583_v57 }
 0x15d   :  { %1480 = vmatpush1.bf16.msra.mxu0 %v5024_v0  ;;  %1521 = vmatpush1.bf16.msra.mxu1 %v5027_v1  ;;  %v1571_v0 = vld [vmem:[#allocation7 + $0x80] sm:$0xff] }
 0x15e   :  { %1481 = vmatprep.subr.bf16.mxu0 %v5032_v2  ;;  %1522 = vmatprep.subr.bf16.mxu1 %v5035_v3  ;;  %v1575_v1 = vld [vmem:[#allocation7 + $0xa0] sm:$0xff] }
 0x15f   :  { %v1731_v3 = vld [vmem:[#allocation7 + $0x580] sm:$0xff] }
 0x161   :  { %1482 = vmatpush2.bf16.msra.mxu0 %v5030_v4  ;;  %1523 = vmatpush2.bf16.msra.mxu1 %v5033_v5  ;;  %v1735_v4 = vld [vmem:[#allocation7 + $0x5a0] sm:$0xff]  ;;  %v4392_v5 = vcombine.low %v1579_v56, %v1583_v57 }
 0x162   :  { %1483 = vmatprep.subr.bf16.mxu0 %v5038_v9  ;;  %1524 = vmatprep.subr.bf16.mxu1 %v5041_v12  ;;  %v4544_v9 = vcombine.low %v1731_v3, %v1735_v4  ;;  %v4545_v12 = vcombine.high %v1731_v3, %v1735_v4  ;;  %v1651_v56 = vld [vmem:[#allocation7 + $0x300] sm:$0xff] }
 0x163   :  { %v1655_v57 = vld [vmem:[#allocation7 + $0x320] sm:$0xff] }
 0x164   :  { %v1803_v3 = vld [vmem:[#allocation7 + $0x7c0] sm:$0xff] }
 0x165   :  { %1484 = vmatpush2.bf16.msra.mxu0 %v5036_v13  ;;  %1525 = vmatpush2.bf16.msra.mxu1 %v5039_v14  ;;  %v4385_v13 = vcombine.high %v1571_v0, %v1575_v1  ;;  %v1563_v14 = vld [vmem:[#allocation7 + $0x40] sm:$0xff] }
 0x166   :  { %1485 = vmatprep.subr.bf16.mxu0 %v5044_v15  ;;  %1526 = vmatprep.subr.bf16.mxu1 %v5047_v16  ;;  %v1567_v15 = vld [vmem:[#allocation7 + $0x60] sm:$0xff] }
 0x167   :  { %v1723_v16 = vld [vmem:[#allocation7 + $0x540] sm:$0xff] }
 0x168   :  { %v1807_v4 = vld [vmem:[#allocation7 + $0x7e0] sm:$0xff] }
 0x169   :  { %1486 = vmatpush2.bf16.msra.mxu0 %v5042_v17  ;;  %1527 = vmatpush2.bf16.msra.mxu1 %v5045_v18  ;;  %v1727_v17 = vld [vmem:[#allocation7 + $0x560] sm:$0xff]  ;;  %v4384_v18 = vcombine.low %v1571_v0, %v1575_v1 }
 0x16a   :  { %1487 = vmatprep.subr.bf16.mxu0 %v5050_v19  ;;  %1528 = vmatprep.subr.bf16.mxu1 %v5053_v20  ;;  %v4536_v19 = vcombine.low %v1723_v16, %v1727_v17  ;;  %v4537_v20 = vcombine.high %v1723_v16, %v1727_v17  ;;  %v1643_v0 = vld [vmem:[#allocation7 + $0x2c0] sm:$0xff] }
 0x16b   :  { %v1647_v1 = vld [vmem:[#allocation7 + $0x2e0] sm:$0xff] }
 0x16c   :  { %v1795_v16 = vld [vmem:[#allocation7 + $0x780] sm:$0xff] }
 0x16d   :  { %1488 = vmatpush2.bf16.msra.mxu0 %v5048_v21  ;;  %1529 = vmatpush2.bf16.msra.mxu1 %v5051_v22  ;;  %v4377_v21 = vcombine.high %v1563_v14, %v1567_v15  ;;  %v1555_v22 = vld [vmem:[#allocation7] sm:$0xff] }
 0x16e   :  { %1489 = vmatprep.subr.bf16.mxu0 %v5056_v23  ;;  %1530 = vmatprep.subr.bf16.mxu1 %v5059_v24  ;;  %v1559_v23 = vld [vmem:[#allocation7 + $0x20] sm:$0xff] }
 0x16f   :  { %v1715_v24 = vld [vmem:[#allocation7 + $0x500] sm:$0xff] }
 0x170   :  { %v1799_v17 = vld [vmem:[#allocation7 + $0x7a0] sm:$0xff] }
 0x171   :  { %1490 = vmatpush2.bf16.msra.mxu0 %v5054_v25  ;;  %1531 = vmatpush2.bf16.msra.mxu1 %v5057_v26  ;;  %v1719_v25 = vld [vmem:[#allocation7 + $0x520] sm:$0xff]  ;;  %v4376_v26 = vcombine.low %v1563_v14, %v1567_v15 }
 0x172   :  { %1491 = vmatprep.subr.bf16.mxu0 %v5062_v27  ;;  %1532 = vmatprep.subr.bf16.mxu1 %v5065_v28  ;;  %v4528_v27 = vcombine.low %v1715_v24, %v1719_v25  ;;  %v4529_v28 = vcombine.high %v1715_v24, %v1719_v25  ;;  %v1635_v14 = vld [vmem:[#allocation7 + $0x280] sm:$0xff] }
 0x173   :  { %v1639_v15 = vld [vmem:[#allocation7 + $0x2a0] sm:$0xff] }
 0x174   :  { %v1787_v24 = vld [vmem:[#allocation7 + $0x740] sm:$0xff] }
 0x175   :  { %1492 = vmatpush2.bf16.msra.mxu0 %v5060_v29  ;;  %1533 = vmatpush2.bf16.msra.mxu1 %v5063_v31  ;;  %v4369_v29 = vcombine.high %v1555_v22, %v1559_v23  ;;  %v1675_v31 = vld [vmem:[#allocation7 + $0x3c0] sm:$0xff] }
 0x176   :  { %1493 = vmatprep.subr.bf16.mxu0 %v5068_v32  ;;  %1534 = vmatprep.subr.bf16.mxu1 %v5071_v33  ;;  %v1679_v32 = vld [vmem:[#allocation7 + $0x3e0] sm:$0xff] }
 0x177   :  { %v1707_v33 = vld [vmem:[#allocation7 + $0x4c0] sm:$0xff]  ;;  %v4489_v39 = vcombine.high %v1675_v31, %v1679_v32  ;;  %v4488_v44 = vcombine.low %v1675_v31, %v1679_v32 }
 0x178   :  { %v1791_v25 = vld [vmem:[#allocation7 + $0x760] sm:$0xff] }
 0x179   :  { %1494 = vmatpush2.bf16.msra.mxu0 %v5066_v34  ;;  %1535 = vmatpush2.bf16.msra.mxu1 %v5069_v35  ;;  %v1711_v34 = vld [vmem:[#allocation7 + $0x4e0] sm:$0xff]  ;;  %v4368_v35 = vcombine.low %v1555_v22, %v1559_v23 }
 0x17a   :  { %1495 = vmatprep.subr.bf16.mxu0 %v5074_v36  ;;  %1536 = vmatprep.subr.bf16.mxu1 %v5077_v38  ;;  %v4520_v36 = vcombine.low %v1707_v33, %v1711_v34  ;;  %v4521_v38 = vcombine.high %v1707_v33, %v1711_v34  ;;  %v1627_v22 = vld [vmem:[#allocation7 + $0x240] sm:$0xff] }
 0x17b   :  { %v1631_v23 = vld [vmem:[#allocation7 + $0x260] sm:$0xff] }
 0x17c   :  { %v1619_v31 = vld [vmem:[#allocation7 + $0x200] sm:$0xff] }
 0x17d   :  { %1496 = vmatpush2.bf16.msra.mxu0 %v5072_v41  ;;  %1537 = vmatpush2.bf16.msra.mxu1 %v5075_v42  ;;  %v1671_v41 = vld [vmem:[#allocation7 + $0x3a0] sm:$0xff] }
 0x17e   :  { %3133 = vmatprep.subr.bf16.mxu0 %v4425_v43  ;;  %v1699_v42 = vld [vmem:[#allocation7 + $0x480] sm:$0xff]  ;;  %v4480_v52 = vcombine.low %v1667_v40, %v1671_v41 }
 0x17f   :  { %v1703_v43 = vld [vmem:[#allocation7 + $0x4a0] sm:$0xff] }
 0x180   :  { %1498 = vmatmul.mubr.bf16.vlgmr.msra.gmra.mxu0 %v5349_v37  ;;  %1539 = vmatmul.mubr.bf16.vlgmr.msra.gmra.mxu1 %v5347_v30  ;;  %v4553_v37 = vcombine.high %v1739_v58, %v1743_v59  ;;  %v5357_v30 = vld [vmem:[#allocation7 + $0x1e8] sm:$0xff]  ;;  %v4512_v45 = vcombine.low %v1699_v42, %v1703_v43  ;;  %v1683_v58 = vld [vmem:[#allocation7 + $0x400] sm:$0xff] }
 0x181   :  { %3134 = vmatpush1.bf16.msra.mxu0 %v4424_v46  ;;  %v4426_v2 = vcombine.low %v5355_v62, %v5357_v30  ;;  %v4513_v46 = vcombine.high %v1699_v42, %v1703_v43  ;;  %v1687_v59 = vld [vmem:[#allocation7 + $0x420] sm:$0xff] }
 0x182   :  { %3135 = vmatprep.subr.bf16.mxu0 %v4417_v47  ;;  %3174 = vmatprep.subr.bf16.mxu1 %v4553_v37  ;;  %v4481_v47 = vcombine.high %v1667_v40, %v1671_v41  ;;  %v4497_v37 = vcombine.high %v1683_v58, %v1687_v59  ;;  %v1623_v32 = vld [vmem:[#allocation7 + $0x220] sm:$0xff] }
 0x183   :  { %3175 = vmatpush1.bf16.msra.mxu1 %v4552_v61  ;;  %v4496_v61 = vcombine.low %v1683_v58, %v1687_v59  ;;  %v1779_v33 = vld [vmem:[#allocation7 + $0x700] sm:$0xff]  ;;  %v4432_v42 = vcombine.low %v1619_v31, %v1623_v32  ;;  %v5363_v58 = vld [vmem:[#allocation7 + $0x5c8] sm:$0xff] }
 0x184   :  { %3176 = vmatprep.subr.bf16.mxu1 %v4545_v12  ;;  %v4617_v12 = vcombine.high %v1803_v3, %v1807_v4  ;;  %v1783_v34 = vld [vmem:[#allocation7 + $0x720] sm:$0xff]  ;;  %v5365_v59 = vld [vmem:[#allocation7 + $0x5e8] sm:$0xff] }
 0x185   :  { %3136 = vmatpush1.bf16.msra.mxu0 %v4416_v50  ;;  %v1691_v50 = vld [vmem:[#allocation7 + $0x440] sm:$0xff] }
 0x186   :  { %3137 = vmatprep.subr.bf16.mxu0 %v4409_v51  ;;  %v1695_v51 = vld [vmem:[#allocation7 + $0x460] sm:$0xff] }
 0x187   :  { %3177 = vmatpush1.bf16.msra.mxu1 %v4544_v9  ;;  %v4504_v53 = vcombine.low %v1691_v50, %v1695_v51  ;;  %v4616_v9 = vcombine.low %v1803_v3, %v1807_v4  ;;  %v1771_v40 = vld [vmem:[#allocation7 + $0x6c0] sm:$0xff] }
 0x188   :  { %3178 = vmatprep.subr.bf16.mxu1 %v4537_v20  ;;  %v4609_v20 = vcombine.high %v1795_v16, %v1799_v17  ;;  %v1775_v41 = vld [vmem:[#allocation7 + $0x6e0] sm:$0xff] }
 0x189   :  { %3138 = vmatpush1.bf16.msra.mxu0 %v4408_v54  ;;  %v4505_v54 = vcombine.high %v1691_v50, %v1695_v51  ;;  %v4584_v43 = vcombine.low %v1771_v40, %v1775_v41  ;;  %v1755_v50 = vld [vmem:[#allocation7 + $0x640] sm:$0xff] }
 0x18a   :  { %3139 = vmatprep.subr.bf16.mxu0 %v4401_v55  ;;  %v4473_v55 = vcombine.high %v1659_v48, %v1663_v49  ;;  %v1759_v51 = vld [vmem:[#allocation7 + $0x660] sm:$0xff] }
 0x18b   :  { %3179 = vmatpush1.bf16.msra.mxu1 %v4536_v19  ;;  %v4608_v19 = vcombine.low %v1795_v16, %v1799_v17 }
 0x18c   :  { %3180 = vmatprep.subr.bf16.mxu1 %v4529_v28  ;;  %v4601_v28 = vcombine.high %v1787_v24, %v1791_v25 }
 0x18d   :  { %3140 = vmatpush1.bf16.msra.mxu0 %v4400_v60  ;;  %v4472_v60 = vcombine.low %v1659_v48, %v1663_v49 }
 0x18e   :  { %3141 = vmatprep.subr.bf16.mxu0 %v4393_v63  ;;  %v4465_v63 = vcombine.high %v1651_v56, %v1655_v57 }
 0x18f   :  { %3181 = vmatpush1.bf16.msra.mxu1 %v4528_v27  ;;  %v4600_v27 = vcombine.low %v1787_v24, %v1791_v25 }
 0x190   :  { %3182 = vmatprep.subr.bf16.mxu1 %v4521_v38  ;;  %v4593_v38 = vcombine.high %v1779_v33, %v1783_v34 }
 0x191   :  { %3142 = vmatpush1.bf16.msra.mxu0 %v4392_v5  ;;  %v4464_v5 = vcombine.low %v1651_v56, %v1655_v57 }
 0x192   :  { %3143 = vmatprep.subr.bf16.mxu0 %v4385_v13  ;;  %v4457_v13 = vcombine.high %v1643_v0, %v1647_v1 }
 0x193   :  { %3183 = vmatpush1.bf16.msra.mxu1 %v4520_v36  ;;  %v4592_v36 = vcombine.low %v1779_v33, %v1783_v34 }
 0x194   :  { %3184 = vmatprep.subr.bf16.mxu1 %v4513_v46  ;;  %v1763_v46 = vld [vmem:[#allocation7 + $0x680] sm:$0xff] }
 0x195   :  { %3144 = vmatpush1.bf16.msra.mxu0 %v4384_v18  ;;  %v4456_v18 = vcombine.low %v1643_v0, %v1647_v1 }
 0x196   :  { %3145 = vmatprep.subr.bf16.mxu0 %v4377_v21  ;;  %v4449_v21 = vcombine.high %v1635_v14, %v1639_v15 }
 0x197   :  { %3185 = vmatpush1.bf16.msra.mxu1 %v4512_v45  ;;  %v4427_v45 = vcombine.high %v5355_v62, %v5357_v30  ;;  %v1576_v62 = vld [vmem:[#allocation7 + $0xa8] sm:$0xff] }
 0x198   :  { %3186 = vmatprep.subr.bf16.mxu1 %v4505_v54  ;;  %v1747_v54 = vld [vmem:[#allocation7 + $0x600] sm:$0xff] }
 0x199   :  { %3146 = vmatpush1.bf16.msra.mxu0 %v4376_v26  ;;  %v4448_v26 = vcombine.low %v1635_v14, %v1639_v15 }
 0x19a   :  { %3147 = vmatprep.subr.bf16.mxu0 %v4369_v29  ;;  %v4441_v29 = vcombine.high %v1627_v22, %v1631_v23 }
 0x19b   :  { %3187 = vmatpush1.bf16.msra.mxu1 %v4504_v53  ;;  %v4568_v53 = vcombine.low %v1755_v50, %v1759_v51 }
 0x19c   :  { %3188 = vmatprep.subr.bf16.mxu1 %v4497_v37  ;;  %v5374_v37 = vld [vmem:[%s5459_s6] sm:$0xf] }
 0x19d   :  { %3148 = vmatpush1.bf16.msra.mxu0 %v4368_v35  ;;  %v4440_v35 = vcombine.low %v1627_v22, %v1631_v23  ;;  %v730_v0 = vrot.slane %v5374_v37, %v5338_v10  ;;  %v1608_v22 = vld [vmem:[#allocation7 + $0x1a8] sm:$0xff] }
 0x19e   :  { %3149 = vmatprep.subr.bf16.mxu0 %v4489_v39  ;;  %v4433_v39 = vcombine.high %v1619_v31, %v1623_v32  ;;  %v1588_v31 = vld [vmem:[#allocation7 + $0x108] sm:$0xff] }
 0x19f   :  { %3189 = vmatpush1.bf16.msra.mxu1 %v4496_v61  ;;  %v4554_v61 = vcombine.low %v5363_v58, %v5365_v59  ;;  %v1592_v32 = vld [vmem:[#allocation7 + $0x128] sm:$0xff] }
 0x1a0   :  { %3190 = vmatprep.subr.bf16.mxu1 %v4617_v12  ;;  %v4403_v34 = vcombine.high %v1588_v31, %v1592_v32 }
 0x1a1   :  { %3150 = vmatpush2.bf16.msra.mxu0 %v4488_v44  ;;  %v4585_v44 = vcombine.high %v1771_v40, %v1775_v41  ;;  %v1572_v40 = vld [vmem:[#allocation7 + $0x88] sm:$0xff] }
 0x1a2   :  { %3151 = vmatprep.subr.bf16.mxu0 %v4481_v47  ;;  %v1767_v47 = vld [vmem:[#allocation7 + $0x6a0] sm:$0xff]  ;;  %v1564_v41 = vld [vmem:[#allocation7 + $0x48] sm:$0xff] }
 0x1a3   :  { %3191 = vmatpush2.bf16.msra.mxu1 %v4616_v9  ;;  %v4576_v48 = vcombine.low %v1763_v46, %v1767_v47  ;;  %v4577_v49 = vcombine.high %v1763_v46, %v1767_v47  ;;  %v1560_v46 = vld [vmem:[#allocation7 + $0x28] sm:$0xff] }
 0x1a4   :  { %3192 = vmatprep.subr.bf16.mxu1 %v4609_v20 }
 0x1a5   :  { %3152 = vmatpush2.bf16.msra.mxu0 %v4480_v52  ;;  %v4569_v52 = vcombine.high %v1755_v50, %v1759_v51  ;;  %v1680_v50 = vld [vmem:[#allocation7 + $0x3e8] sm:$0xff] }
 0x1a6   :  { %3153 = vmatprep.subr.bf16.mxu0 %v4473_v55  ;;  %v1751_v55 = vld [vmem:[#allocation7 + $0x620] sm:$0xff] }
 0x1a7   :  { %3193 = vmatpush2.bf16.msra.mxu1 %v4608_v19  ;;  %v4561_v56 = vcombine.high %v1747_v54, %v1751_v55  ;;  %v4560_v57 = vcombine.low %v1747_v54, %v1751_v55  ;;  %v1672_v54 = vld [vmem:[#allocation7 + $0x3a8] sm:$0xff] }
 0x1a8   :  { %3194 = vmatprep.subr.bf16.mxu1 %v4601_v28 }
 0x1a9   :  { %3154 = vmatpush2.bf16.msra.mxu0 %v4472_v60  ;;  %v4555_v60 = vcombine.high %v5363_v58, %v5365_v59 }
 0x1aa   :  { %3155 = vmatprep.subr.bf16.mxu0 %v4465_v63  ;;  %v726_v63 = vrot.slane %v5374_v37, %v5329_v7 }
 0x1ab   :  { %3195 = vmatpush2.bf16.msra.mxu1 %v4600_v27  ;;  %v1600_v27 = vld [vmem:[#allocation7 + $0x168] sm:$0xff] }
 0x1ac   :  { %3196 = vmatprep.subr.bf16.mxu1 %v4593_v38  ;;  %v4402_v38 = vcombine.low %v1588_v31, %v1592_v32 }
 0x1ad   :  { %3156 = vmatpush2.bf16.msra.mxu0 %v4464_v5 }
 0x1ae   :  { %3157 = vmatprep.subr.bf16.mxu0 %v4457_v13 }
 0x1af   :  { %3197 = vmatpush2.bf16.msra.mxu1 %v4592_v36  ;;  %v1584_v36 = vld [vmem:[#allocation7 + $0xe8] sm:$0xff] }
 0x1b0   :  { %3198 = vmatprep.subr.bf16.mxu1 %v4585_v44 }
 0x1b1   :  { %3158 = vmatpush2.bf16.msra.mxu0 %v4456_v18 }
 0x1b2   :  { %3159 = vmatprep.subr.bf16.mxu0 %v4449_v21  ;;  %v1604_v21 = vld [vmem:[#allocation7 + $0x188] sm:$0xff] }
 0x1b3   :  { %3199 = vmatpush2.bf16.msra.mxu1 %v4584_v43  ;;  %v4419_v25 = vcombine.high %v1604_v21, %v1608_v22  ;;  %v4418_v28 = vcombine.low %v1604_v21, %v1608_v22  ;;  %v4386_v43 = vcombine.low %v1572_v40, %v1576_v62  ;;  %v734_v21 = vrot.slane %v5374_v37, %v5332_v8 }
 0x1b4   :  { %3200 = vmatprep.subr.bf16.mxu1 %v4577_v49  ;;  %v1676_v49 = vld [vmem:[#allocation7 + $0x3c8] sm:$0xff] }
 0x1b5   :  { %3160 = vmatpush2.bf16.msra.mxu0 %v4448_v26  ;;  %v1596_v26 = vld [vmem:[#allocation7 + $0x148] sm:$0xff]  ;;  %v4490_v55 = vcombine.low %v1676_v49, %v1680_v50 }
 0x1b6   :  { %3161 = vmatprep.subr.bf16.mxu0 %v4441_v29  ;;  %v4411_v29 = vcombine.high %v1596_v26, %v1600_v27  ;;  %v4410_v33 = vcombine.low %v1596_v26, %v1600_v27  ;;  %v738_v26 = vrot.slane %v5374_v37, %v5341_v11  ;;  %v1620_v27 = vld [vmem:[#allocation7 + $0x208] sm:$0xff] }
 0x1b7   :  { %3201 = vmatpush2.bf16.msra.mxu1 %v4576_v48 }
 0x1b8   :  { %3202 = vmatprep.subr.bf16.mxu1 %v4569_v52  ;;  %v4491_v52 = vcombine.high %v1676_v49, %v1680_v50  ;;  %v1605_v49 = vld [vmem:[#allocation7 + $0x190] sm:$0xff] }
 0x1b9   :  { %3162 = vmatpush2.bf16.msra.mxu0 %v4440_v35  ;;  %v1580_v35 = vld [vmem:[#allocation7 + $0xc8] sm:$0xff]  ;;  %v1609_v50 = vld [vmem:[#allocation7 + $0x1b0] sm:$0xff] }
 0x1ba   :  { %3163 = vmatprep.subr.bf16.mxu0 %v4433_v39  ;;  %v4395_v39 = vcombine.high %v1580_v35, %v1584_v36  ;;  %v4394_v30 = vcombine.low %v1580_v35, %v1584_v36 }
 0x1bb   :  { %3203 = vmatpush2.bf16.msra.mxu1 %v4568_v53  ;;  %v1668_v53 = vld [vmem:[#allocation7 + $0x388] sm:$0xff] }
 0x1bc   :  { %3204 = vmatprep.subr.bf16.mxu1 %v4561_v56  ;;  %v4483_v56 = vcombine.high %v1668_v53, %v1672_v54 }
 0x1bd   :  { %3164 = vmatpush2.bf16.msra.mxu0 %v4432_v42  ;;  %v1568_v42 = vld [vmem:[#allocation7 + $0x68] sm:$0xff] }
 0x1be   :  { %3215 = vmatprep.subr.bf16.mxu0 %v4427_v45  ;;  %v4379_v44 = vcombine.high %v1564_v41, %v1568_v42  ;;  %v1556_v45 = vld [vmem:[#allocation7 + $0x8] sm:$0xff]  ;;  %v4378_v47 = vcombine.low %v1564_v41, %v1568_v42 }
 0x1bf   :  { %3205 = vmatpush2.bf16.msra.mxu1 %v4560_v57  ;;  %v4371_v48 = vcombine.high %v1556_v45, %v1560_v46  ;;  %v4370_v51 = vcombine.low %v1556_v45, %v1560_v46  ;;  %v1660_v57 = vld [vmem:[#allocation7 + $0x348] sm:$0xff] }
 0x1c0   :  { %3256 = vmatprep.subr.bf16.mxu1 %v4555_v60  ;;  %v1664_v60 = vld [vmem:[#allocation7 + $0x368] sm:$0xff] }
 0x200   :  { %v1417_v1 = vpop.f32.mrf.mxu0  ;;  %v1458_v3 = vpop.f32.mrf.mxu1 }
 0x201   :  { %v1418_v4 = vadd.f32 %v1417_v1, %v726_v63  ;;  %v4482_v63 = vcombine.low %v1668_v53, %v1672_v54  ;;  %v1652_v1 = vld [vmem:[#allocation7 + $0x308] sm:$0xff] }
 0x202   :  { %v1419_v5 = vpop.f32.mrf.mxu0  ;;  %v1460_v9 = vpop.f32.mrf.mxu1 }
 0x203   :  { %v1459_v12 = vadd.f32 %v1458_v3, %v1418_v4  ;;  %v1420_v13 = vadd.f32 %v1419_v5, %v730_v0  ;;  %v4475_v0 = vcombine.high %v1660_v57, %v1664_v60  ;;  %v1656_v3 = vld [vmem:[#allocation7 + $0x328] sm:$0xff]  ;;  %v4474_v4 = vcombine.low %v1660_v57, %v1664_v60  ;;  %v1597_v60 = vld [vmem:[#allocation7 + $0x150] sm:$0xff] }
 0x204   :  { %v1421_v14 = vpop.f32.mrf.mxu0  ;;  %v1462_v15 = vpop.f32.mrf.mxu1  ;;  %v4467_v5 = vcombine.high %v1652_v1, %v1656_v3  ;;  %v1728_v57 = vld [vmem:[#allocation7 + $0x568] sm:$0xff] }
 0x205   :  { %v1461_v16 = vadd.f32 %v1460_v9, %v1420_v13  ;;  %v1547_v17 = vmax.f32 %v1459_v12, 0.0  ;;  %v1644_v9 = vld [vmem:[#allocation7 + $0x2c8] sm:$0xff]  ;;  %v4466_v13 = vcombine.low %v1652_v1, %v1656_v3  ;;  %v4420_v1 = vcombine.low %v1605_v49, %v1609_v50 }
 0x206   :  { %v1422_v18 = vpop.f32.mrf.mxu0  ;;  %v1463_v19 = vpop.f32.mrf.mxu1  ;;  %v1648_v12 = vld [vmem:[#allocation7 + $0x2e8] sm:$0xff] }
 0x207   :  { %v1548_v20 = vmax.f32 %v1461_v16, 0.0  ;;  %v5382_v24 = vpack.c.bf16 %v1547_v17, %v1547_v17  ;;  %v4459_v14 = vcombine.high %v1644_v9, %v1648_v12  ;;  %v1636_v15 = vld [vmem:[#allocation7 + $0x288] sm:$0xff]  ;;  %v4458_v17 = vcombine.low %v1644_v9, %v1648_v12  ;;  %v1589_v12 = vld [vmem:[#allocation7 + $0x110] sm:$0xff] }
 0x208   :  { %v1640_v16 = vld [vmem:[#allocation7 + $0x2a8] sm:$0xff] }
 0x209   :  { %v5380_v23 = vpack.c.bf16 %v1548_v20, %v1548_v20  ;;  %v4451_v18 = vcombine.high %v1636_v15, %v1640_v16  ;;  %v1628_v19 = vld [vmem:[#allocation7 + $0x248] sm:$0xff]  ;;  %v4450_v22 = vcombine.low %v1636_v15, %v1640_v16 }
 0x20a   :  { %v1632_v20 = vld [vmem:[#allocation7 + $0x268] sm:$0xff] }
 0x20b   :  { %3165 = vmatprep.mubr.bf16.mxu0 %v5380_v23  ;;  %v1720_v9 = vld [vmem:[#allocation7 + $0x528] sm:$0xff] }
 0x20c   :  { %3166 = vmatmul.mubr.bf16.vlgmr.msra.gmra.mxu0 %v5382_v24  ;;  %v1708_v15 = vld [vmem:[#allocation7 + $0x4c8] sm:$0xff] }
 0x20d   :  { %3216 = vmatpush1.bf16.msra.mxu0 %v4426_v2  ;;  %3247 = vmatprep.mubr.bf16.mxu0 %v5380_v23  ;;  %v4387_v2 = vcombine.high %v1572_v40, %v1576_v62  ;;  %v1613_v40 = vld [vmem:[#allocation7 + $0x1d0] sm:$0xff]  ;;  %v1712_v16 = vld [vmem:[#allocation7 + $0x4e8] sm:$0xff] }
 0x20e   :  { %3217 = vmatprep.subr.bf16.mxu0 %v4419_v25  ;;  %v4443_v25 = vcombine.high %v1628_v19, %v1632_v20  ;;  %v1617_v62 = vld [vmem:[#allocation7 + $0x1f0] sm:$0xff] }
 0x20f   :  { %v4429_v45 = vcombine.high %v1613_v40, %v1617_v62  ;;  %v4428_v53 = vcombine.low %v1613_v40, %v1617_v62 }
 0x211   :  { %3218 = vmatpush1.bf16.msra.mxu0 %v4418_v28  ;;  %v1624_v28 = vld [vmem:[#allocation7 + $0x228] sm:$0xff] }
 0x212   :  { %3219 = vmatprep.subr.bf16.mxu0 %v4411_v29  ;;  %v4435_v36 = vcombine.high %v1620_v27, %v1624_v28  ;;  %v4434_v37 = vcombine.low %v1620_v27, %v1624_v28  ;;  %v1573_v27 = vld [vmem:[#allocation7 + $0x90] sm:$0xff] }
 0x213   :  { %v1577_v28 = vld [vmem:[#allocation7 + $0xb0] sm:$0xff] }
 0x214   :  { %v4388_v40 = vcombine.low %v1573_v27, %v1577_v28 }
 0x215   :  { %3220 = vmatpush1.bf16.msra.mxu0 %v4410_v33  ;;  %v4442_v33 = vcombine.low %v1628_v19, %v1632_v20 }
 0x216   :  { %3221 = vmatprep.subr.bf16.mxu0 %v4403_v34 }
 0x219   :  { %3222 = vmatpush1.bf16.msra.mxu0 %v4402_v38 }
 0x21a   :  { %3223 = vmatprep.subr.bf16.mxu0 %v4395_v39 }
 0x21d   :  { %3224 = vmatpush1.bf16.msra.mxu0 %v4394_v30 }
 0x21e   :  { %3225 = vmatprep.subr.bf16.mxu0 %v4387_v2 }
 0x221   :  { %3226 = vmatpush1.bf16.msra.mxu0 %v4386_v43 }
 0x222   :  { %3227 = vmatprep.subr.bf16.mxu0 %v4379_v44 }
 0x225   :  { %3228 = vmatpush1.bf16.msra.mxu0 %v4378_v47  ;;  %v1732_v47 = vld [vmem:[#allocation7 + $0x588] sm:$0xff] }
 0x226   :  { %3229 = vmatprep.subr.bf16.mxu0 %v4371_v48  ;;  %v1736_v48 = vld [vmem:[#allocation7 + $0x5a8] sm:$0xff] }
 0x227   :  { %v4547_v54 = vcombine.high %v1732_v47, %v1736_v48 }
 0x229   :  { %3230 = vmatpush1.bf16.msra.mxu0 %v4370_v51 }
 0x22a   :  { %3231 = vmatprep.subr.bf16.mxu0 %v4491_v52 }
 0x22d   :  { %3232 = vmatpush2.bf16.msra.mxu0 %v4490_v55  ;;  %v4421_v55 = vcombine.high %v1605_v49, %v1609_v50  ;;  %v1677_v49 = vld [vmem:[#allocation7 + $0x3d0] sm:$0xff] }
 0x22e   :  { %3233 = vmatprep.subr.bf16.mxu0 %v4483_v56  ;;  %v1724_v56 = vld [vmem:[#allocation7 + $0x548] sm:$0xff]  ;;  %v1681_v50 = vld [vmem:[#allocation7 + $0x3f0] sm:$0xff] }
 0x22f   :  { %v4539_v3 = vcombine.high %v1724_v56, %v1728_v57 }
 0x231   :  { %3234 = vmatpush2.bf16.msra.mxu0 %v4482_v63  ;;  %v1601_v63 = vld [vmem:[#allocation7 + $0x170] sm:$0xff] }
 0x232   :  { %3235 = vmatprep.subr.bf16.mxu0 %v4475_v0  ;;  %v4546_v0 = vcombine.low %v1732_v47, %v1736_v48  ;;  %v4412_v58 = vcombine.low %v1597_v60, %v1601_v63  ;;  %v1804_v47 = vld [vmem:[#allocation7 + $0x7c8] sm:$0xff] }
 0x233   :  { %v1808_v48 = vld [vmem:[#allocation7 + $0x7e8] sm:$0xff] }
 0x235   :  { %3236 = vmatpush2.bf16.msra.mxu0 %v4474_v4  ;;  %v4413_v4 = vcombine.high %v1597_v60, %v1601_v63  ;;  %v1800_v60 = vld [vmem:[#allocation7 + $0x7a8] sm:$0xff]  ;;  %v1669_v63 = vld [vmem:[#allocation7 + $0x390] sm:$0xff] }
 0x236   :  { %3237 = vmatprep.subr.bf16.mxu0 %v4467_v5  ;;  %v1716_v5 = vld [vmem:[#allocation7 + $0x508] sm:$0xff] }
 0x237   :  { %v4531_v59 = vcombine.high %v1716_v5, %v1720_v9  ;;  %v4530_v19 = vcombine.low %v1716_v5, %v1720_v9  ;;  %v1788_v9 = vld [vmem:[#allocation7 + $0x748] sm:$0xff] }
 0x239   :  { %3238 = vmatpush2.bf16.msra.mxu0 %v4466_v13  ;;  %v1593_v13 = vld [vmem:[#allocation7 + $0x130] sm:$0xff] }
 0x23a   :  { %3239 = vmatprep.subr.bf16.mxu0 %v4459_v14  ;;  %v4538_v14 = vcombine.low %v1724_v56, %v1728_v57  ;;  %v4404_v20 = vcombine.low %v1589_v12, %v1593_v13  ;;  %v4493_v56 = vcombine.high %v1677_v49, %v1681_v50  ;;  %v1796_v57 = vld [vmem:[#allocation7 + $0x788] sm:$0xff] }
 0x23d   :  { %3240 = vmatpush2.bf16.msra.mxu0 %v4458_v17  ;;  %v1581_v17 = vld [vmem:[#allocation7 + $0xd0] sm:$0xff] }
 0x23e   :  { %3241 = vmatprep.subr.bf16.mxu0 %v4451_v18  ;;  %v1585_v18 = vld [vmem:[#allocation7 + $0xf0] sm:$0xff] }
 0x240   :  { %v1499_v29 = vpop.f32.mrf.mxu0  ;;  %v1540_v31 = vpop.f32.mrf.mxu1 }
 0x241   :  { %v1500_v32 = vadd.f32 %v1499_v29, %v734_v21  ;;  %3242 = vmatpush2.bf16.msra.mxu0 %v4450_v22  ;;  %v4523_v21 = vcombine.high %v1708_v15, %v1712_v16  ;;  %v4397_v22 = vcombine.high %v1581_v17, %v1585_v18  ;;  %v4522_v29 = vcombine.low %v1708_v15, %v1712_v16  ;;  %v1780_v16 = vld [vmem:[#allocation7 + $0x708] sm:$0xff] }
 0x242   :  { %v1501_v34 = vpop.f32.mrf.mxu0  ;;  %v1542_v35 = vpop.f32.mrf.mxu1  ;;  %3243 = vmatprep.subr.bf16.mxu0 %v4443_v25  ;;  %v1700_v25 = vld [vmem:[#allocation7 + $0x488] sm:$0xff] }
 0x243   :  { %v1541_v38 = vadd.f32 %v1540_v31, %v1500_v32  ;;  %v1502_v39 = vadd.f32 %v1501_v34, %v738_v26  ;;  %v1704_v26 = vld [vmem:[#allocation7 + $0x4a8] sm:$0xff]  ;;  %v4396_v31 = vcombine.low %v1581_v17, %v1585_v18  ;;  %v1653_v18 = vld [vmem:[#allocation7 + $0x310] sm:$0xff] }
 0x244   :  { %v1503_v30 = vpop.f32.mrf.mxu0  ;;  %v1544_v2 = vpop.f32.mrf.mxu1  ;;  %v4515_v32 = vcombine.high %v1700_v25, %v1704_v26  ;;  %v1692_v34 = vld [vmem:[#allocation7 + $0x448] sm:$0xff] }
 0x245   :  { %v1543_v41 = vadd.f32 %v1542_v35, %v1502_v39  ;;  %3244 = vmatpush2.bf16.msra.mxu0 %v4442_v33  ;;  %v1549_v42 = vmax.f32 %v1541_v38, 0.0  ;;  %v4389_v33 = vcombine.high %v1573_v27, %v1577_v28  ;;  %v1696_v35 = vld [vmem:[#allocation7 + $0x468] sm:$0xff]  ;;  %v1569_v38 = vld [vmem:[#allocation7 + $0x70] sm:$0xff]  ;;  %v4514_v39 = vcombine.low %v1700_v25, %v1704_v26 }
 0x246   :  { %v1504_v43 = vpop.f32.mrf.mxu0  ;;  %v1545_v44 = vpop.f32.mrf.mxu1  ;;  %3245 = vmatprep.subr.bf16.mxu0 %v4435_v36  ;;  %v1565_v36 = vld [vmem:[#allocation7 + $0x50] sm:$0xff]  ;;  %v4507_v62 = vcombine.high %v1692_v34, %v1696_v35  ;;  %v1684_v2 = vld [vmem:[#allocation7 + $0x408] sm:$0xff] }
 0x247   :  { %v1550_v46 = vmax.f32 %v1543_v41, 0.0  ;;  %v5396_v52 = vpack.c.bf16 %v1549_v42, %v1549_v42  ;;  %v4381_v30 = vcombine.high %v1565_v36, %v1569_v38  ;;  %v1688_v41 = vld [vmem:[#allocation7 + $0x428] sm:$0xff]  ;;  %v1561_v42 = vld [vmem:[#allocation7 + $0x30] sm:$0xff]  ;;  %v4506_v43 = vcombine.low %v1692_v34, %v1696_v35 }
 0x248   :  { %v4380_v44 = vcombine.low %v1565_v36, %v1569_v38  ;;  %v1784_v17 = vld [vmem:[#allocation7 + $0x728] sm:$0xff]  ;;  %v1645_v28 = vld [vmem:[#allocation7 + $0x2d0] sm:$0xff] }
 0x249   :  { %v5394_v51 = vpack.c.bf16 %v1550_v46, %v1550_v46  ;;  %3246 = vmatpush2.bf16.msra.mxu0 %v4434_v37  ;;  %v1557_v37 = vld [vmem:[#allocation7 + $0x10] sm:$0xff]  ;;  %v1772_v26 = vld [vmem:[#allocation7 + $0x6c8] sm:$0xff] }
 0x24a   :  { %3297 = vmatprep.subr.bf16.mxu0 %v4429_v45  ;;  %v4499_v45 = vcombine.high %v1684_v2, %v1688_v41  ;;  %v4373_v46 = vcombine.high %v1557_v37, %v1561_v42  ;;  %v1776_v27 = vld [vmem:[#allocation7 + $0x6e8] sm:$0xff]  ;;  %v1637_v38 = vld [vmem:[#allocation7 + $0x290] sm:$0xff] }
 0x24b   :  { %3206 = vmatprep.mubr.bf16.mxu1 %v5394_v51  ;;  %v1764_v35 = vld [vmem:[#allocation7 + $0x688] sm:$0xff] }
 0x24c   :  { %3207 = vmatmul.mubr.bf16.vlgmr.msra.gmra.mxu1 %v5396_v52  ;;  %3248 = vmatmul.mubr.bf16.vlgmr.msra.gmra.mxu0 %v5382_v24  ;;  %v1768_v36 = vld [vmem:[#allocation7 + $0x6a8] sm:$0xff] }
 0x24d   :  { %3257 = vmatpush1.bf16.msra.mxu1 %v4554_v61  ;;  %3288 = vmatprep.mubr.bf16.mxu1 %v5394_v51  ;;  %v4405_v61 = vcombine.high %v1589_v12, %v1593_v13  ;;  %v1792_v12 = vld [vmem:[#allocation7 + $0x768] sm:$0xff]  ;;  %v1661_v13 = vld [vmem:[#allocation7 + $0x350] sm:$0xff] }
 0x24e   :  { %3298 = vmatpush1.bf16.msra.mxu0 %v4428_v53  ;;  %3329 = vmatprep.mubr.bf16.mxu0 %v5380_v23  ;;  %v4498_v53 = vcombine.low %v1684_v2, %v1688_v41  ;;  %v1756_v41 = vld [vmem:[#allocation7 + $0x648] sm:$0xff] }
 0x24f   :  { %3258 = vmatprep.subr.bf16.mxu1 %v4547_v54  ;;  %3299 = vmatprep.subr.bf16.mxu0 %v4421_v55  ;;  %v4372_v54 = vcombine.low %v1557_v37, %v1561_v42  ;;  %v4619_v55 = vcombine.high %v1804_v47, %v1808_v48  ;;  %v1760_v37 = vld [vmem:[#allocation7 + $0x668] sm:$0xff]  ;;  %v1629_v42 = vld [vmem:[#allocation7 + $0x250] sm:$0xff] }
 0x251   :  { %3259 = vmatpush1.bf16.msra.mxu1 %v4546_v0  ;;  %v1673_v0 = vld [vmem:[#allocation7 + $0x3b0] sm:$0xff] }
 0x252   :  { %3300 = vmatpush1.bf16.msra.mxu0 %v4420_v1  ;;  %3260 = vmatprep.subr.bf16.mxu1 %v4539_v3  ;;  %v4618_v1 = vcombine.low %v1804_v47, %v1808_v48  ;;  %v4492_v3 = vcombine.low %v1677_v49, %v1681_v50  ;;  %v4485_v5 = vcombine.high %v1669_v63, %v1673_v0  ;;  %v1748_v48 = vld [vmem:[#allocation7 + $0x608] sm:$0xff]  ;;  %v1621_v50 = vld [vmem:[#allocation7 + $0x210] sm:$0xff] }
 0x253   :  { %3301 = vmatprep.subr.bf16.mxu0 %v4413_v4  ;;  %v4611_v4 = vcombine.high %v1796_v57, %v1800_v60  ;;  %v1752_v49 = vld [vmem:[#allocation7 + $0x628] sm:$0xff] }
 0x255   :  { %3261 = vmatpush1.bf16.msra.mxu1 %v4538_v14  ;;  %v1665_v14 = vld [vmem:[#allocation7 + $0x370] sm:$0xff] }
 0x256   :  { %3302 = vmatpush1.bf16.msra.mxu0 %v4412_v58  ;;  %3262 = vmatprep.subr.bf16.mxu1 %v4531_v59  ;;  %v4610_v58 = vcombine.low %v1796_v57, %v1800_v60  ;;  %v4484_v59 = vcombine.low %v1669_v63, %v1673_v0  ;;  %v4477_v15 = vcombine.high %v1661_v13, %v1665_v14  ;;  %v1741_v60 = vld [vmem:[#allocation7 + $0x5d0] sm:$0xff]  ;;  %v1614_v0 = vld [vmem:[#allocation7 + $0x1d8] sm:$0xff] }
 0x257   :  { %3303 = vmatprep.subr.bf16.mxu0 %v4405_v61  ;;  %v4603_v61 = vcombine.high %v1788_v9, %v1792_v12  ;;  %v1745_v63 = vld [vmem:[#allocation7 + $0x5f0] sm:$0xff] }
 0x259   :  { %3263 = vmatpush1.bf16.msra.mxu1 %v4530_v19  ;;  %v1657_v19 = vld [vmem:[#allocation7 + $0x330] sm:$0xff] }
 0x25a   :  { %3304 = vmatpush1.bf16.msra.mxu0 %v4404_v20  ;;  %3264 = vmatprep.subr.bf16.mxu1 %v4523_v21  ;;  %v4602_v20 = vcombine.low %v1788_v9, %v1792_v12  ;;  %v4476_v21 = vcombine.low %v1661_v13, %v1665_v14  ;;  %v4469_v25 = vcombine.high %v1653_v18, %v1657_v19  ;;  %v1733_v12 = vld [vmem:[#allocation7 + $0x590] sm:$0xff] }
 0x25b   :  { %3305 = vmatprep.subr.bf16.mxu0 %v4397_v22  ;;  %v4595_v22 = vcombine.high %v1780_v16, %v1784_v17  ;;  %v1737_v13 = vld [vmem:[#allocation7 + $0x5b0] sm:$0xff]  ;;  %v4556_v14 = vcombine.low %v1741_v60, %v1745_v63 }
 0x25d   :  { %3265 = vmatpush1.bf16.msra.mxu1 %v4522_v29  ;;  %v1649_v29 = vld [vmem:[#allocation7 + $0x2f0] sm:$0xff] }
 0x25e   :  { %3306 = vmatpush1.bf16.msra.mxu0 %v4396_v31  ;;  %3266 = vmatprep.subr.bf16.mxu1 %v4515_v32  ;;  %v4594_v31 = vcombine.low %v1780_v16, %v1784_v17  ;;  %v4468_v32 = vcombine.low %v1653_v18, %v1657_v19  ;;  %v4461_v34 = vcombine.high %v1645_v28, %v1649_v29  ;;  %v1725_v16 = vld [vmem:[#allocation7 + $0x550] sm:$0xff]  ;;  %v1598_v19 = vld [vmem:[#allocation7 + $0x158] sm:$0xff] }
 0x25f   :  { %3307 = vmatprep.subr.bf16.mxu0 %v4389_v33  ;;  %v4587_v33 = vcombine.high %v1772_v26, %v1776_v27  ;;  %v1729_v17 = vld [vmem:[#allocation7 + $0x570] sm:$0xff] }
 0x261   :  { %3267 = vmatpush1.bf16.msra.mxu1 %v4514_v39  ;;  %v1641_v39 = vld [vmem:[#allocation7 + $0x2b0] sm:$0xff] }
 0x262   :  { %3308 = vmatpush1.bf16.msra.mxu0 %v4388_v40  ;;  %3268 = vmatprep.subr.bf16.mxu1 %v4507_v62  ;;  %v4586_v40 = vcombine.low %v1772_v26, %v1776_v27  ;;  %v4460_v62 = vcombine.low %v1645_v28, %v1649_v29  ;;  %v4453_v2 = vcombine.high %v1637_v38, %v1641_v39  ;;  %v1717_v27 = vld [vmem:[#allocation7 + $0x510] sm:$0xff]  ;;  %v1590_v29 = vld [vmem:[#allocation7 + $0x118] sm:$0xff] }
 0x263   :  { %3309 = vmatprep.subr.bf16.mxu0 %v4381_v30  ;;  %v4579_v30 = vcombine.high %v1764_v35, %v1768_v36  ;;  %v1721_v28 = vld [vmem:[#allocation7 + $0x530] sm:$0xff] }
 0x265   :  { %3269 = vmatpush1.bf16.msra.mxu1 %v4506_v43  ;;  %v1633_v43 = vld [vmem:[#allocation7 + $0x270] sm:$0xff] }
 0x266   :  { %3310 = vmatpush1.bf16.msra.mxu0 %v4380_v44  ;;  %3270 = vmatprep.subr.bf16.mxu1 %v4499_v45  ;;  %v4578_v44 = vcombine.low %v1764_v35, %v1768_v36  ;;  %v4452_v45 = vcombine.low %v1637_v38, %v1641_v39  ;;  %v4445_v47 = vcombine.high %v1629_v42, %v1633_v43  ;;  %v1709_v36 = vld [vmem:[#allocation7 + $0x4d0] sm:$0xff]  ;;  %v1582_v39 = vld [vmem:[#allocation7 + $0xd8] sm:$0xff] }
 0x267   :  { %3311 = vmatprep.subr.bf16.mxu0 %v4373_v46  ;;  %v4571_v46 = vcombine.high %v1756_v41, %v1760_v37  ;;  %v1713_v38 = vld [vmem:[#allocation7 + $0x4f0] sm:$0xff] }
 0x269   :  { %3271 = vmatpush1.bf16.msra.mxu1 %v4498_v53  ;;  %v1625_v53 = vld [vmem:[#allocation7 + $0x230] sm:$0xff] }
 0x26a   :  { %3312 = vmatpush1.bf16.msra.mxu0 %v4372_v54  ;;  %3272 = vmatprep.subr.bf16.mxu1 %v4619_v55  ;;  %v4570_v54 = vcombine.low %v1756_v41, %v1760_v37  ;;  %v4444_v55 = vcombine.low %v1629_v42, %v1633_v43  ;;  %v4437_v57 = vcombine.high %v1621_v50, %v1625_v53  ;;  %v1701_v41 = vld [vmem:[#allocation7 + $0x490] sm:$0xff]  ;;  %v1574_v42 = vld [vmem:[#allocation7 + $0x98] sm:$0xff] }
 0x26b   :  { %3313 = vmatprep.subr.bf16.mxu0 %v4493_v56  ;;  %v4563_v56 = vcombine.high %v1748_v48, %v1752_v49  ;;  %v1705_v37 = vld [vmem:[#allocation7 + $0x4b0] sm:$0xff]  ;;  %v1578_v43 = vld [vmem:[#allocation7 + $0xb8] sm:$0xff] }
 0x26d   :  { %3273 = vmatpush2.bf16.msra.mxu1 %v4618_v1  ;;  %v1618_v1 = vld [vmem:[#allocation7 + $0x1f8] sm:$0xff] }
 0x26e   :  { %3314 = vmatpush2.bf16.msra.mxu0 %v4492_v3  ;;  %3274 = vmatprep.subr.bf16.mxu1 %v4611_v4  ;;  %v4562_v3 = vcombine.low %v1748_v48, %v1752_v49  ;;  %v4436_v4 = vcombine.low %v1621_v50, %v1625_v53  ;;  %v4431_v9 = vcombine.high %v1614_v0, %v1618_v1  ;;  %v1693_v48 = vld [vmem:[#allocation7 + $0x450] sm:$0xff]  ;;  %v1566_v50 = vld [vmem:[#allocation7 + $0x58] sm:$0xff] }
 0x26f   :  { %3315 = vmatprep.subr.bf16.mxu0 %v4485_v5  ;;  %v4557_v5 = vcombine.high %v1741_v60, %v1745_v63  ;;  %v1697_v49 = vld [vmem:[#allocation7 + $0x470] sm:$0xff]  ;;  %v1570_v53 = vld [vmem:[#allocation7 + $0x78] sm:$0xff] }
 0x270   :  { %v1685_v60 = vld [vmem:[#allocation7 + $0x410] sm:$0xff] }
 0x271   :  { %3275 = vmatpush2.bf16.msra.mxu1 %v4610_v58  ;;  %v1606_v58 = vld [vmem:[#allocation7 + $0x198] sm:$0xff]  ;;  %v1689_v63 = vld [vmem:[#allocation7 + $0x430] sm:$0xff] }
 0x272   :  { %3316 = vmatpush2.bf16.msra.mxu0 %v4484_v59  ;;  %3276 = vmatprep.subr.bf16.mxu1 %v4603_v61  ;;  %v1610_v59 = vld [vmem:[#allocation7 + $0x1b8] sm:$0xff]  ;;  %v4430_v61 = vcombine.low %v1614_v0, %v1618_v1 }
 0x273   :  { %3317 = vmatprep.subr.bf16.mxu0 %v4477_v15  ;;  %v4549_v15 = vcombine.high %v1733_v12, %v1737_v13  ;;  %v4423_v18 = vcombine.high %v1606_v58, %v1610_v59  ;;  %v1558_v0 = vld [vmem:[#allocation7 + $0x18] sm:$0xff] }
 0x274   :  { %v1562_v1 = vld [vmem:[#allocation7 + $0x38] sm:$0xff] }
 0x275   :  { %3277 = vmatpush2.bf16.msra.mxu1 %v4602_v20  ;;  %v1602_v20 = vld [vmem:[#allocation7 + $0x178] sm:$0xff] }
 0x276   :  { %3318 = vmatpush2.bf16.msra.mxu0 %v4476_v21  ;;  %3278 = vmatprep.subr.bf16.mxu1 %v4595_v22  ;;  %v4548_v21 = vcombine.low %v1733_v12, %v1737_v13  ;;  %v4422_v22 = vcombine.low %v1606_v58, %v1610_v59  ;;  %v4415_v26 = vcombine.high %v1598_v19, %v1602_v20  ;;  %v1805_v12 = vld [vmem:[#allocation7 + $0x7d0] sm:$0xff]  ;;  %v1682_v58 = vld [vmem:[#allocation7 + $0x3f8] sm:$0xff] }
 0x277   :  { %3319 = vmatprep.subr.bf16.mxu0 %v4469_v25  ;;  %v4541_v25 = vcombine.high %v1725_v16, %v1729_v17  ;;  %v1809_v13 = vld [vmem:[#allocation7 + $0x7f0] sm:$0xff]  ;;  %v4500_v59 = vcombine.low %v1685_v60, %v1689_v63 }
 0x279   :  { %3279 = vmatpush2.bf16.msra.mxu1 %v4594_v31  ;;  %v1594_v31 = vld [vmem:[#allocation7 + $0x138] sm:$0xff] }
 0x27a   :  { %3320 = vmatpush2.bf16.msra.mxu0 %v4468_v32  ;;  %3280 = vmatprep.subr.bf16.mxu1 %v4587_v33  ;;  %v4540_v32 = vcombine.low %v1725_v16, %v1729_v17  ;;  %v4414_v33 = vcombine.low %v1598_v19, %v1602_v20  ;;  %v4407_v35 = vcombine.high %v1590_v29, %v1594_v31  ;;  %v1797_v17 = vld [vmem:[#allocation7 + $0x790] sm:$0xff]  ;;  %v1670_v19 = vld [vmem:[#allocation7 + $0x398] sm:$0xff] }
 0x27b   :  { %3321 = vmatprep.subr.bf16.mxu0 %v4461_v34  ;;  %v4533_v34 = vcombine.high %v1717_v27, %v1721_v28  ;;  %v1674_v20 = vld [vmem:[#allocation7 + $0x3b8] sm:$0xff] }
 0x27d   :  { %3281 = vmatpush2.bf16.msra.mxu1 %v4586_v40  ;;  %v1586_v40 = vld [vmem:[#allocation7 + $0xf8] sm:$0xff] }
 0x27e   :  { %3322 = vmatpush2.bf16.msra.mxu0 %v4460_v62  ;;  %3282 = vmatprep.subr.bf16.mxu1 %v4579_v30  ;;  %v4406_v62 = vcombine.low %v1590_v29, %v1594_v31  ;;  %v4525_v30 = vcombine.high %v1709_v36, %v1713_v38  ;;  %v1662_v29 = vld [vmem:[#allocation7 + $0x358] sm:$0xff] }
 0x27f   :  { %3323 = vmatprep.subr.bf16.mxu0 %v4453_v2  ;;  %v4399_v2 = vcombine.high %v1582_v39, %v1586_v40  ;;  %v1666_v31 = vld [vmem:[#allocation7 + $0x378] sm:$0xff] }
 0x281   :  { %3283 = vmatpush2.bf16.msra.mxu1 %v4578_v44  ;;  %v4524_v44 = vcombine.low %v1709_v36, %v1713_v38  ;;  %v1781_v36 = vld [vmem:[#allocation7 + $0x710] sm:$0xff] }
 0x282   :  { %3324 = vmatpush2.bf16.msra.mxu0 %v4452_v45  ;;  %3284 = vmatprep.subr.bf16.mxu1 %v4571_v46  ;;  %v4398_v45 = vcombine.low %v1582_v39, %v1586_v40  ;;  %v4517_v46 = vcombine.high %v1701_v41, %v1705_v37  ;;  %v1785_v38 = vld [vmem:[#allocation7 + $0x730] sm:$0xff]  ;;  %v1654_v39 = vld [vmem:[#allocation7 + $0x318] sm:$0xff] }
 0x283   :  { %3325 = vmatprep.subr.bf16.mxu0 %v4445_v47  ;;  %v4391_v47 = vcombine.high %v1574_v42, %v1578_v43  ;;  %v1658_v40 = vld [vmem:[#allocation7 + $0x338] sm:$0xff] }
 0x285   :  { %3285 = vmatpush2.bf16.msra.mxu1 %v4570_v54  ;;  %v4516_v54 = vcombine.low %v1701_v41, %v1705_v37  ;;  %v1773_v41 = vld [vmem:[#allocation7 + $0x6d0] sm:$0xff] }
 0x286   :  { %3326 = vmatpush2.bf16.msra.mxu0 %v4444_v55  ;;  %3286 = vmatprep.subr.bf16.mxu1 %v4563_v56  ;;  %v4390_v55 = vcombine.low %v1574_v42, %v1578_v43  ;;  %v4509_v56 = vcombine.high %v1693_v48, %v1697_v49  ;;  %v1777_v37 = vld [vmem:[#allocation7 + $0x6f0] sm:$0xff]  ;;  %v1646_v42 = vld [vmem:[#allocation7 + $0x2d8] sm:$0xff] }
 0x287   :  { %3327 = vmatprep.subr.bf16.mxu0 %v4437_v57  ;;  %v4383_v57 = vcombine.high %v1566_v50, %v1570_v53  ;;  %v1650_v43 = vld [vmem:[#allocation7 + $0x2f8] sm:$0xff] }
 0x289   :  { %3287 = vmatpush2.bf16.msra.mxu1 %v4562_v3  ;;  %v4508_v3 = vcombine.low %v1693_v48, %v1697_v49  ;;  %v1765_v48 = vld [vmem:[#allocation7 + $0x690] sm:$0xff] }
 0x28a   :  { %3328 = vmatpush2.bf16.msra.mxu0 %v4436_v4  ;;  %3338 = vmatprep.subr.bf16.mxu1 %v4557_v5  ;;  %v4382_v4 = vcombine.low %v1566_v50, %v1570_v53  ;;  %v4501_v5 = vcombine.high %v1685_v60, %v1689_v63  ;;  %v1769_v49 = vld [vmem:[#allocation7 + $0x6b0] sm:$0xff]  ;;  %v1638_v50 = vld [vmem:[#allocation7 + $0x298] sm:$0xff] }
 0x28b   :  { %3379 = vmatprep.subr.bf16.mxu0 %v4431_v9  ;;  %v4375_v9 = vcombine.high %v1558_v0, %v1562_v1  ;;  %v1642_v53 = vld [vmem:[#allocation7 + $0x2b8] sm:$0xff]  ;;  %v1757_v60 = vld [vmem:[#allocation7 + $0x650] sm:$0xff] }
 0x28c   :  { %3289 = vmatmul.mubr.bf16.vlgmr.msra.gmra.mxu1 %v5396_v52  ;;  %v1761_v63 = vld [vmem:[#allocation7 + $0x670] sm:$0xff] }
 0x28d   :  { %3330 = vmatmul.mubr.bf16.vlgmr.msra.gmra.mxu0 %v5382_v24  ;;  %3339 = vmatpush1.bf16.msra.mxu1 %v4556_v14  ;;  %v1678_v14 = vld [vmem:[#allocation7 + $0x3d8] sm:$0xff] }
 0x28e   :  { %3370 = vmatprep.mubr.bf16.mxu1 %v5394_v51  ;;  %3380 = vmatpush1.bf16.msra.mxu0 %v4430_v61  ;;  %v4374_v61 = vcombine.low %v1558_v0, %v1562_v1  ;;  %v4495_v16 = vcombine.high %v1678_v14, %v1682_v58  ;;  %v1630_v0 = vld [vmem:[#allocation7 + $0x258] sm:$0xff] }
 0x28f   :  { %3411 = vmatprep.mubr.bf16.mxu0 %v5380_v23  ;;  %3340 = vmatprep.subr.bf16.mxu1 %v4549_v15  ;;  %v4532_v23 = vcombine.low %v1717_v27, %v1721_v28  ;;  %v4621_v15 = vcombine.high %v1805_v12, %v1809_v13  ;;  %v1789_v27 = vld [vmem:[#allocation7 + $0x750] sm:$0xff]  ;;  %v1634_v1 = vld [vmem:[#allocation7 + $0x278] sm:$0xff] }
 0x290   :  { %3381 = vmatprep.subr.bf16.mxu0 %v4423_v18  ;;  %v1801_v18 = vld [vmem:[#allocation7 + $0x7b0] sm:$0xff] }
 0x291   :  { %3341 = vmatpush1.bf16.msra.mxu1 %v4548_v21  ;;  %v4620_v21 = vcombine.low %v1805_v12, %v1809_v13  ;;  %v1793_v28 = vld [vmem:[#allocation7 + $0x770] sm:$0xff] }
 0x292   :  { %3382 = vmatpush1.bf16.msra.mxu0 %v4422_v22  ;;  %3342 = vmatprep.subr.bf16.mxu1 %v4541_v25  ;;  %v4494_v22 = vcombine.low %v1678_v14, %v1682_v58  ;;  %v4613_v25 = vcombine.high %v1797_v17, %v1801_v18  ;;  %v1749_v12 = vld [vmem:[#allocation7 + $0x610] sm:$0xff]  ;;  %v1622_v14 = vld [vmem:[#allocation7 + $0x218] sm:$0xff] }
 0x293   :  { %3383 = vmatprep.subr.bf16.mxu0 %v4415_v26  ;;  %v4487_v26 = vcombine.high %v1670_v19, %v1674_v20  ;;  %v1753_v13 = vld [vmem:[#allocation7 + $0x630] sm:$0xff]  ;;  %v1626_v58 = vld [vmem:[#allocation7 + $0x238] sm:$0xff] }
 0x295   :  { %3343 = vmatpush1.bf16.msra.mxu1 %v4540_v32  ;;  %v4612_v32 = vcombine.low %v1797_v17, %v1801_v18  ;;  %v1742_v17 = vld [vmem:[#allocation7 + $0x5d8] sm:$0xff] }
 0x296   :  { %3384 = vmatpush1.bf16.msra.mxu0 %v4414_v33  ;;  %3344 = vmatprep.subr.bf16.mxu1 %v4533_v34  ;;  %v4486_v33 = vcombine.low %v1670_v19, %v1674_v20  ;;  %v4605_v34 = vcombine.high %v1789_v27, %v1793_v28  ;;  %v1746_v18 = vld [vmem:[#allocation7 + $0x5f8] sm:$0xff]  ;;  %v4564_v19 = vcombine.low %v1749_v12, %v1753_v13 }
 0x297   :  { %3385 = vmatprep.subr.bf16.mxu0 %v4407_v35  ;;  %v4479_v35 = vcombine.high %v1662_v29, %v1666_v31  ;;  %v4438_v20 = vcombine.low %v1622_v14, %v1626_v58 }
 0x299   :  { %3345 = vmatpush1.bf16.msra.mxu1 %v4532_v23  ;;  %v4604_v23 = vcombine.low %v1789_v27, %v1793_v28  ;;  %v4558_v27 = vcombine.low %v1742_v17, %v1746_v18 }
 0x29a   :  { %3386 = vmatpush1.bf16.msra.mxu0 %v4406_v62  ;;  %3346 = vmatprep.subr.bf16.mxu1 %v4525_v30  ;;  %v4478_v62 = vcombine.low %v1662_v29, %v1666_v31  ;;  %v4597_v30 = vcombine.high %v1781_v36, %v1785_v38  ;;  %v1726_v29 = vld [vmem:[#allocation7 + $0x558] sm:$0xff] }
 0x29b   :  { %3387 = vmatprep.subr.bf16.mxu0 %v4399_v2  ;;  %v4471_v2 = vcombine.high %v1654_v39, %v1658_v40  ;;  %v1730_v31 = vld [vmem:[#allocation7 + $0x578] sm:$0xff] }
 0x29d   :  { %3347 = vmatpush1.bf16.msra.mxu1 %v4524_v44  ;;  %v4596_v44 = vcombine.low %v1781_v36, %v1785_v38  ;;  %v4543_v38 = vcombine.high %v1726_v29, %v1730_v31 }
 0x29e   :  { %3388 = vmatpush1.bf16.msra.mxu0 %v4398_v45  ;;  %3348 = vmatprep.subr.bf16.mxu1 %v4517_v46  ;;  %v4470_v45 = vcombine.low %v1654_v39, %v1658_v40  ;;  %v4589_v46 = vcombine.high %v1773_v41, %v1777_v37  ;;  %v1718_v39 = vld [vmem:[#allocation7 + $0x518] sm:$0xff] }
 0x29f   :  { %3389 = vmatprep.subr.bf16.mxu0 %v4391_v47  ;;  %v4463_v47 = vcombine.high %v1646_v42, %v1650_v43  ;;  %v1722_v40 = vld [vmem:[#allocation7 + $0x538] sm:$0xff] }
 0x2a1   :  { %3349 = vmatpush1.bf16.msra.mxu1 %v4516_v54  ;;  %v4588_v54 = vcombine.low %v1773_v41, %v1777_v37  ;;  %v1710_v37 = vld [vmem:[#allocation7 + $0x4d8] sm:$0xff] }
 0x2a2   :  { %3390 = vmatpush1.bf16.msra.mxu0 %v4390_v55  ;;  %3350 = vmatprep.subr.bf16.mxu1 %v4509_v56  ;;  %v4462_v55 = vcombine.low %v1646_v42, %v1650_v43  ;;  %v4581_v56 = vcombine.high %v1765_v48, %v1769_v49  ;;  %v1714_v42 = vld [vmem:[#allocation7 + $0x4f8] sm:$0xff]  ;;  %v5084_v43 = vld [vmem:[#allocation8 + $0x60] sm:$0xff]  }
 0x2a3   :  { %3391 = vmatprep.subr.bf16.mxu0 %v4383_v57  ;;  %v4455_v57 = vcombine.high %v1638_v50, %v1642_v53 }
 0x2a5   :  { %3351 = vmatpush1.bf16.msra.mxu1 %v4508_v3  ;;  %v4580_v3 = vcombine.low %v1765_v48, %v1769_v49  ;;  %v5085_v48 = vld [vmem:[#allocation8 + $0x20] sm:$0xff]   ;;  %v5086_v49 = vld [vmem:[#allocation8 + $0x58] sm:$0xff]  }
 0x2a6   :  { %3392 = vmatpush1.bf16.msra.mxu0 %v4382_v4  ;;  %3352 = vmatprep.subr.bf16.mxu1 %v4501_v5  ;;  %v4454_v4 = vcombine.low %v1638_v50, %v1642_v53  ;;  %v4573_v5 = vcombine.high %v1757_v60, %v1761_v63  ;;  %v4526_v50 = vcombine.low %v1710_v37, %v1714_v42 }
 0x2a7   :  { %3393 = vmatprep.subr.bf16.mxu0 %v4375_v9  ;;  %v4447_v9 = vcombine.high %v1630_v0, %v1634_v1 }
 0x2a9   :  { %3353 = vmatpush1.bf16.msra.mxu1 %v4500_v59  ;;  %v4572_v59 = vcombine.low %v1757_v60, %v1761_v63 }
 0x2aa   :  { %3394 = vmatpush1.bf16.msra.mxu0 %v4374_v61  ;;  %3354 = vmatprep.subr.bf16.mxu1 %v4621_v15  ;;  %v4446_v61 = vcombine.low %v1630_v0, %v1634_v1  ;;  %v4565_v15 = vcombine.high %v1749_v12, %v1753_v13  ;;  %v1686_v0 = vld [vmem:[#allocation7 + $0x418] sm:$0xff] }
 0x2ab   :  { %3395 = vmatprep.subr.bf16.mxu0 %v4495_v16  ;;  %v4439_v16 = vcombine.high %v1622_v14, %v1626_v58  ;;  %v1690_v1 = vld [vmem:[#allocation7 + $0x438] sm:$0xff]  ;;  %v5091_v14 = vld [vmem:[#allocation8 + $0x8] sm:$0xff]   ;;  %v5092_v58 = vld [vmem:[#allocation8 + $0x40] sm:$0xff]  }
 0x2ac   :  { %v1806_v12 = vld [vmem:[#allocation7 + $0x7d8] sm:$0xff] }
 0x2ad   :  { %3355 = vmatpush2.bf16.msra.mxu1 %v4620_v21  ;;  %v4559_v21 = vcombine.high %v1742_v17, %v1746_v18  ;;  %v1810_v13 = vld [vmem:[#allocation7 + $0x7f8] sm:$0xff]  ;;  %v5093_v17 = vld [vmem:[#allocation8] sm:$0xff]  }
 0x2ae   :  { %3396 = vmatpush2.bf16.msra.mxu0 %v4494_v22  ;;  %3356 = vmatprep.subr.bf16.mxu1 %v4613_v25  ;;  %v1734_v22 = vld [vmem:[#allocation7 + $0x598] sm:$0xff] }
 0x2af   :  { %3397 = vmatprep.subr.bf16.mxu0 %v4487_v26  ;;  %v1738_v25 = vld [vmem:[#allocation7 + $0x5b8] sm:$0xff] }
 0x2b0   :  { %v5078_v26 = vld [vmem:[#allocation8 + $0x78] sm:$0xff]   ;;  %v4551_v28 = vcombine.high %v1734_v22, %v1738_v25 }
 0x2b1   :  { %3357 = vmatpush2.bf16.msra.mxu1 %v4612_v32  ;;  %v5079_v32 = vld [vmem:[#allocation8 + $0x38] sm:$0xff]  }
 0x2b2   :  { %3398 = vmatpush2.bf16.msra.mxu0 %v4486_v33  ;;  %3358 = vmatprep.subr.bf16.mxu1 %v4605_v34  ;;  %v5080_v34 = vld [vmem:[#allocation8 + $0x70] sm:$0xff]   ;;  %v5110_v18 = vld [vmem:[#allocation8 + $0x178] sm:$0xff]  }
 0x2b3   :  { %3399 = vmatprep.subr.bf16.mxu0 %v4479_v35  ;;  %v4550_v35 = vcombine.low %v1734_v22, %v1738_v25  ;;  %v1794_v22 = vld [vmem:[#allocation7 + $0x778] sm:$0xff] }
 0x2b5   :  { %3359 = vmatpush2.bf16.msra.mxu1 %v4604_v23  ;;  %v5081_v23 = vld [vmem:[#allocation8 + $0x30] sm:$0xff]  }
 0x2b6   :  { %3400 = vmatpush2.bf16.msra.mxu0 %v4478_v62  ;;  %3360 = vmatprep.subr.bf16.mxu1 %v4597_v30  ;;  %v5082_v30 = vld [vmem:[#allocation8 + $0x68] sm:$0xff]  }
 0x2b7   :  { %3401 = vmatprep.subr.bf16.mxu0 %v4471_v2  ;;  %v4542_v2 = vcombine.low %v1726_v29, %v1730_v31 }
 0x2b9   :  { %3361 = vmatpush2.bf16.msra.mxu1 %v4596_v44  ;;  %v4534_v44 = vcombine.low %v1718_v39, %v1722_v40 }
 0x2ba   :  { %3402 = vmatpush2.bf16.msra.mxu0 %v4470_v45  ;;  %3362 = vmatprep.subr.bf16.mxu1 %v4589_v46  ;;  %v4527_v45 = vcombine.high %v1710_v37, %v1714_v42  ;;  %v1702_v46 = vld [vmem:[#allocation7 + $0x498] sm:$0xff] }
 0x2bb   :  { %3403 = vmatprep.subr.bf16.mxu0 %v4463_v47  ;;  %v1706_v47 = vld [vmem:[#allocation7 + $0x4b8] sm:$0xff] }
 0x2bc   :  { %v4519_v53 = vcombine.high %v1702_v46, %v1706_v47  ;;  %v4518_v60 = vcombine.low %v1702_v46, %v1706_v47  ;;  %v1750_v37 = vld [vmem:[#allocation7 + $0x618] sm:$0xff] }
 0x2bd   :  { %3363 = vmatpush2.bf16.msra.mxu1 %v4588_v54  ;;  %v1694_v54 = vld [vmem:[#allocation7 + $0x458] sm:$0xff] }
 0x2be   :  { %3404 = vmatpush2.bf16.msra.mxu0 %v4462_v55  ;;  %3364 = vmatprep.subr.bf16.mxu1 %v4581_v56  ;;  %v1698_v55 = vld [vmem:[#allocation7 + $0x478] sm:$0xff] }
 0x2bf   :  { %3405 = vmatprep.subr.bf16.mxu0 %v4455_v57  ;;  %v5087_v56 = vld [vmem:[#allocation8 + $0x18] sm:$0xff]   ;;  %v5088_v57 = vld [vmem:[#allocation8 + $0x50] sm:$0xff]   ;;  %v4511_v63 = vcombine.high %v1694_v54, %v1698_v55 }
 0x2c0   :  { %v1754_v42 = vld [vmem:[#allocation7 + $0x638] sm:$0xff] }
 0x2c1   :  { %3365 = vmatpush2.bf16.msra.mxu1 %v4580_v3  ;;  %v5089_v3 = vld [vmem:[#allocation8 + $0x10] sm:$0xff]   ;;  %v5094_v46 = vld [vmem:[#allocation8 + $0xf8] sm:$0xff]  }
 0x2c2   :  { %3406 = vmatpush2.bf16.msra.mxu0 %v4454_v4  ;;  %3366 = vmatprep.subr.bf16.mxu1 %v4573_v5  ;;  %v5090_v4 = vld [vmem:[#allocation8 + $0x48] sm:$0xff]   ;;  %v4510_v5 = vcombine.low %v1694_v54, %v1698_v55 }
 0x2c3   :  { %3407 = vmatprep.subr.bf16.mxu0 %v4447_v9  ;;  %v4503_v9 = vcombine.high %v1686_v0, %v1690_v1 }
 0x2c5   :  { %3367 = vmatpush2.bf16.msra.mxu1 %v4572_v59  ;;  %v4502_v59 = vcombine.low %v1686_v0, %v1690_v1 }
 0x2c6   :  { %3408 = vmatpush2.bf16.msra.mxu0 %v4446_v61  ;;  %3368 = vmatprep.subr.bf16.mxu1 %v4565_v15  ;;  %v4623_v61 = vcombine.high %v1806_v12, %v1810_v13  ;;  %v1798_v15 = vld [vmem:[#allocation7 + $0x798] sm:$0xff] }
 0x2c7   :  { %3409 = vmatprep.subr.bf16.mxu0 %v4439_v16  ;;  %v1802_v16 = vld [vmem:[#allocation7 + $0x7b8] sm:$0xff] }
 0x2c8   :  { %v4614_v25 = vcombine.low %v1798_v15, %v1802_v16 }
 0x2c9   :  { %3369 = vmatpush2.bf16.msra.mxu1 %v4564_v19  ;;  %v4622_v19 = vcombine.low %v1806_v12, %v1810_v13  ;;  %v5100_v12 = vld [vmem:[#allocation8 + $0xe0] sm:$0xff]   ;;  %v5111_v13 = vld [vmem:[#allocation8 + $0x138] sm:$0xff]  }
 0x2ca   :  { %3410 = vmatpush2.bf16.msra.mxu0 %v4438_v20  ;;  %3420 = vmatprep.subr.bf16.mxu1 %v4559_v21  ;;  %v4615_v20 = vcombine.high %v1798_v15, %v1802_v16  ;;  %v1790_v21 = vld [vmem:[#allocation7 + $0x758] sm:$0xff]  ;;  %v5113_v15 = vld [vmem:[#allocation8 + $0x130] sm:$0xff]   ;;  %v5114_v16 = vld [vmem:[#allocation8 + $0x168] sm:$0xff]  }
 0x2cb   :  { %4689 = vmatprep.subr.bf16.mxu0 %v5078_v26  ;;  %v4607_v26 = vcombine.high %v1790_v21, %v1794_v22  ;;  %v4606_v29 = vcombine.low %v1790_v21, %v1794_v22  ;;  %v5105_v21 = vld [vmem:[#allocation8 + $0x90] sm:$0xff]   ;;  %v5106_v22 = vld [vmem:[#allocation8 + $0xc8] sm:$0xff]  }
 0x2cc   :  { %3371 = vmatmul.mubr.bf16.vlgmr.msra.gmra.mxu1 %v5396_v52  ;;  %v5411_v33 = vpop.f32.mrf.mxu0 }
 0x2cd   :  { %3412 = vmatmul.mubr.bf16.vlgmr.msra.gmra.mxu0 %v5382_v24  ;;  %3421 = vmatpush1.bf16.msra.mxu1 %v4558_v27  ;;  %v4535_v24 = vcombine.high %v1718_v39, %v1722_v40  ;;  %v1782_v27 = vld [vmem:[#allocation7 + $0x718] sm:$0xff] }
 0x2ce   :  { %3452 = vmatprep.mubr.bf16.mxu1 %v5394_v51  ;;  %v5415_v36 = vpop.f32.mrf.mxu0  ;;  %3422 = vmatprep.subr.bf16.mxu1 %v4551_v28  ;;  %v5083_v51 = vld [vmem:[#allocation8 + $0x28] sm:$0xff]   ;;  %v1786_v28 = vld [vmem:[#allocation7 + $0x738] sm:$0xff] }
 0x2cf   :  { %4690 = vmatpush3.bf16.msra.mxu0 %v5079_v32  ;;  %v4599_v31 = vcombine.high %v1782_v27, %v1786_v28  ;;  %v1774_v32 = vld [vmem:[#allocation7 + $0x6d8] sm:$0xff] }
 0x2d0   :  { %v3171_v62 = vpop.f32.mrf.mxu0  ;;  %4691 = vmatprep.subr.bf16.mxu0 %v5080_v34  ;;  %v1778_v34 = vld [vmem:[#allocation7 + $0x6f8] sm:$0xff] }
 0x2d1   :  { %3423 = vmatpush1.bf16.msra.mxu1 %v4550_v35  ;;  %v4598_v35 = vcombine.low %v1782_v27, %v1786_v28  ;;  %v1766_v39 = vld [vmem:[#allocation7 + $0x698] sm:$0xff]  ;;  %v5107_v27 = vld [vmem:[#allocation8 + $0x88] sm:$0xff]   ;;  %v5108_v28 = vld [vmem:[#allocation8 + $0xc0] sm:$0xff]  }
 0x2d2   :  { %v3172_v41 = vpop.f32.mrf.mxu0  ;;  %3424 = vmatprep.subr.bf16.mxu1 %v4543_v38  ;;  %v4591_v38 = vcombine.high %v1774_v32, %v1778_v34  ;;  %v1770_v40 = vld [vmem:[#allocation7 + $0x6b8] sm:$0xff] }
 0x2d3   :  { %4692 = vmatpush3.bf16.msra.mxu0 %v5081_v23  ;;  %v4590_v23 = vcombine.low %v1774_v32, %v1778_v34  ;;  %v4583_v62 = vcombine.high %v1766_v39, %v1770_v40  ;;  %v4582_v41 = vcombine.low %v1766_v39, %v1770_v40  ;;  %v5109_v32 = vld [vmem:[#allocation8 + $0x80] sm:$0xff]   ;;  %v5126_v34 = vld [vmem:[#allocation8 + $0x1f8] sm:$0xff]   ;;  %v5123_v39 = vld [vmem:[#allocation8 + $0x108] sm:$0xff]  }
 0x2d4   :  { %4693 = vmatprep.subr.bf16.mxu0 %v5082_v30  ;;  %v1758_v30 = vld [vmem:[#allocation7 + $0x658] sm:$0xff]  ;;  %v5124_v40 = vld [vmem:[#allocation8 + $0x140] sm:$0xff]  }
 0x2d5   :  { %3425 = vmatpush1.bf16.msra.mxu1 %v4542_v2  ;;  %v1762_v2 = vld [vmem:[#allocation7 + $0x678] sm:$0xff] }
 0x2d6   :  { %3426 = vmatprep.subr.bf16.mxu1 %v4535_v24  ;;  %v4575_v24 = vcombine.high %v1758_v30, %v1762_v2 }
 0x2d7   :  { %4694 = vmatpush3.bf16.msra.mxu0 %v5083_v51  ;;  %v4574_v51 = vcombine.low %v1758_v30, %v1762_v2 }
 0x2d8   :  { %4695 = vmatprep.subr.bf16.mxu0 %v5084_v43  ;;  %v4567_v43 = vcombine.high %v1750_v37, %v1754_v42 }
 0x2d9   :  { %3427 = vmatpush1.bf16.msra.mxu1 %v4534_v44  ;;  %v5420_v44 = vld [vmem:[%s5460_s7] sm:$0xff] }
 0x2da   :  { %3428 = vmatprep.subr.bf16.mxu1 %v4527_v45  ;;  %v4566_v45 = vcombine.low %v1750_v37, %v1754_v42  ;;  %v1816_v47 = vrot.slane %v5420_v44, %v5329_v7  ;;  %v1828_v30 = vrot.slane %v5420_v44, %v5341_v11  ;;  %v5128_v11 = vld [vmem:[#allocation8 + $0x1f0] sm:$0xff]  }
 0x2db   :  { %4696 = vmatpush3.bf16.msra.mxu0 %v5085_v48  ;;  %v1820_v48 = vrot.slane %v5420_v44, %v5338_v10  ;;  %v5098_v10 = vld [vmem:[#allocation8 + $0xe8] sm:$0xff]  }
 0x2dc   :  { %4697 = vmatprep.subr.bf16.mxu0 %v5086_v49  ;;  %v5095_v49 = vld [vmem:[#allocation8 + $0xb8] sm:$0xff]  }
 0x2dd   :  { %3429 = vmatpush1.bf16.msra.mxu1 %v4526_v50  ;;  %v5096_v50 = vld [vmem:[#allocation8 + $0xf0] sm:$0xff]  }
 0x2de   :  { %3430 = vmatprep.subr.bf16.mxu1 %v4519_v53  ;;  %v3168_v53 = vadd.f32 %v5411_v33, %v1816_v47 }
 0x2df   :  { %4698 = vmatpush3.bf16.msra.mxu0 %v5087_v56  ;;  %v3170_v56 = vadd.f32 %v5415_v36, %v1820_v48 }
 0x2e0   :  { %4699 = vmatprep.subr.bf16.mxu0 %v5088_v57 }
 0x2e1   :  { %3431 = vmatpush1.bf16.msra.mxu1 %v4518_v60  ;;  %v5097_v60 = vld [vmem:[#allocation8 + $0xb0] sm:$0xff]  }
 0x2e2   :  { %3432 = vmatprep.subr.bf16.mxu1 %v4511_v63 }
 0x2e3   :  { %4700 = vmatpush3.bf16.msra.mxu0 %v5089_v3 }
 0x2e4   :  { %4701 = vmatprep.subr.bf16.mxu0 %v5090_v4 }
 0x2e5   :  { %3433 = vmatpush1.bf16.msra.mxu1 %v4510_v5 }
 0x2e6   :  { %3434 = vmatprep.subr.bf16.mxu1 %v4503_v9 }
 0x2e7   :  { %4702 = vmatpush3.bf16.msra.mxu0 %v5091_v14 }
 0x2e8   :  { %4703 = vmatprep.subr.bf16.mxu0 %v5092_v58  ;;  %v5112_v58 = vld [vmem:[#allocation8 + $0x170] sm:$0xff]  }
 0x2e9   :  { %3435 = vmatpush1.bf16.msra.mxu1 %v4502_v59  ;;  %v5101_v59 = vld [vmem:[#allocation8 + $0xa0] sm:$0xff]  }
 0x2ea   :  { %3436 = vmatprep.subr.bf16.mxu1 %v4623_v61  ;;  %v5102_v61 = vld [vmem:[#allocation8 + $0xd8] sm:$0xff]  }
 0x2eb   :  { %4704 = vmatpush3.bf16.msra.mxu0 %v5093_v17  ;;  %v5103_v17 = vld [vmem:[#allocation8 + $0x98] sm:$0xff]  }
 0x2ec   :  { %4733 = vmatprep.subr.bf16.mxu0 %v5110_v18  ;;  %v5104_v18 = vld [vmem:[#allocation8 + $0xd0] sm:$0xff]  }
 0x2ed   :  { %3437 = vmatpush2.bf16.msra.mxu1 %v4622_v19  ;;  %v5115_v19 = vld [vmem:[#allocation8 + $0x128] sm:$0xff]  }
 0x2ee   :  { %3438 = vmatprep.subr.bf16.mxu1 %v4615_v20  ;;  %v5116_v20 = vld [vmem:[#allocation8 + $0x160] sm:$0xff]  }
 0x2f1   :  { %3439 = vmatpush2.bf16.msra.mxu1 %v4614_v25  ;;  %v5117_v25 = vld [vmem:[#allocation8 + $0x120] sm:$0xff]  }
 0x2f2   :  { %3440 = vmatprep.subr.bf16.mxu1 %v4607_v26  ;;  %v5118_v26 = vld [vmem:[#allocation8 + $0x158] sm:$0xff]  }
 0x2f5   :  { %3441 = vmatpush2.bf16.msra.mxu1 %v4606_v29  ;;  %v5119_v29 = vld [vmem:[#allocation8 + $0x118] sm:$0xff]  }
 0x2f6   :  { %3442 = vmatprep.subr.bf16.mxu1 %v4599_v31  ;;  %v5120_v31 = vld [vmem:[#allocation8 + $0x150] sm:$0xff]  }
 0x2f9   :  { %3443 = vmatpush2.bf16.msra.mxu1 %v4598_v35  ;;  %v5121_v35 = vld [vmem:[#allocation8 + $0x110] sm:$0xff]  }
 0x2fa   :  { %3444 = vmatprep.subr.bf16.mxu1 %v4591_v38  ;;  %v5122_v38 = vld [vmem:[#allocation8 + $0x148] sm:$0xff]  }
 0x2fd   :  { %3445 = vmatpush2.bf16.msra.mxu1 %v4590_v23  ;;  %v5125_v23 = vld [vmem:[#allocation8 + $0x100] sm:$0xff]  }
 0x2fe   :  { %3446 = vmatprep.subr.bf16.mxu1 %v4583_v62  ;;  %v1824_v62 = vrot.slane %v5420_v44, %v5332_v8 }
 0x301   :  { %3447 = vmatpush2.bf16.msra.mxu1 %v4582_v41 }
 0x302   :  { %3448 = vmatprep.subr.bf16.mxu1 %v4575_v24 }
 0x305   :  { %3449 = vmatpush2.bf16.msra.mxu1 %v4574_v51 }
 0x306   :  { %3450 = vmatprep.subr.bf16.mxu1 %v4567_v43 }
 0x309   :  { %3451 = vmatpush2.bf16.msra.mxu1 %v4566_v45 }
 0x30a   :  { %4711 = vmatprep.subr.bf16.mxu1 %v5094_v46 }
 0x30c   :  { %3453 = vmatmul.mubr.bf16.vlgmr.msra.gmra.mxu1 %v5396_v52  ;;  %v3208_v54 = vpop.f32.mrf.mxu1  ;;  %v5428_v55 = vpop.f32.mrf.mxu0  ;;  %v5099_v52 = vld [vmem:[#allocation8 + $0xa8] sm:$0xff]  }
 0x30d   :  { %v3209_v57 = vadd.f32 %v3208_v54, %v3168_v53  ;;  %4712 = vmatpush3.bf16.msra.mxu1 %v5095_v49  ;;  %v3250_v2 = vadd.f32 %v5428_v55, %v1824_v62  ;;  %v5127_v54 = vld [vmem:[#allocation8 + $0x1b8] sm:$0xff]   ;;  %v5129_v55 = vld [vmem:[#allocation8 + $0x1b0] sm:$0xff]  }
 0x30e   :  { %v3210_v7 = vpop.f32.mrf.mxu1  ;;  %v5431_v63 = vpop.f32.mrf.mxu0  ;;  %4713 = vmatprep.subr.bf16.mxu1 %v5096_v50 }
 0x30f   :  { %v3211_v0 = vadd.f32 %v3210_v7, %v3170_v56  ;;  %v3461_v1 = vmax.f32 %v3209_v57, 0.0  ;;  %v3252_v24 = vadd.f32 %v5431_v63, %v1828_v30  ;;  %v5130_v57 = vld [vmem:[#allocation8 + $0x1e8] sm:$0xff]   ;;  %v5132_v7 = vld [vmem:[#allocation8 + $0x1e0] sm:$0xff]  }
 0x310   :  { %v3212_v3 = vpop.f32.mrf.mxu1  ;;  %v3253_v4 = vpop.f32.mrf.mxu0  ;;  %v5133_v63 = vld [vmem:[#allocation8 + $0x1a0] sm:$0xff]  }
 0x311   :  { %v3462_v33 = vmax.f32 %v3211_v0, 0.0  ;;  %4714 = vmatpush3.bf16.msra.mxu1 %v5097_v60  ;;  %v3469_v14 = vpack.c.bf16 %v3461_v1, %v3461_v1  ;;  %v5131_v60 = vld [vmem:[#allocation8 + $0x1a8] sm:$0xff]   ;;  %v5135_v0 = vld [vmem:[#allocation8 + $0x198] sm:$0xff]   ;;  %v5136_v1 = vld [vmem:[#allocation8 + $0x1d0] sm:$0xff]  }
 0x312   :  { %v3213_v5 = vpop.f32.mrf.mxu1  ;;  %v3254_v9 = vpop.f32.mrf.mxu0  ;;  %4715 = vmatprep.subr.bf16.mxu1 %v5098_v10  ;;  %v5134_v10 = vld [vmem:[#allocation8 + $0x1d8] sm:$0xff]   ;;  %v5137_v3 = vld [vmem:[#allocation8 + $0x190] sm:$0xff]   ;;  %v5138_v4 = vld [vmem:[#allocation8 + $0x1c8] sm:$0xff]  }
 0x313   :  { %v3470_v36 = vpack.c.bf16 %v3462_v33, %v3462_v33  ;;  %v5139_v33 = vld [vmem:[#allocation8 + $0x188] sm:$0xff]   ;;  %v5141_v5 = vld [vmem:[#allocation8 + $0x180] sm:$0xff]   ;;  %v1831_v9 = vsub.s32 4, %v5326_v6 }
 0x315   :  { %4028 = vmatprep.mubr.bf16.mxu0 %v3470_v36  ;;  %4716 = vmatpush3.bf16.msra.mxu1 %v5099_v52  ;;  %v5140_v52 = vld [vmem:[#allocation8 + $0x1c0] sm:$0xff]   ;;  %v1832_v36 = vrot.slane %v5420_v44, %v1831_v9 }
 0x316   :  { %4029 = vmatmul.mubr.bf16.vlgmr.msra.gmra.mxu0 %v3469_v14  ;;  %4717 = vmatprep.subr.bf16.mxu1 %v5100_v12  ;;  %v1835_v12 = vsub.s32 5, %v5326_v6 }
 0x317   :  { %4734 = vmatpush3.bf16.msra.mxu0 %v5111_v13 }
 0x318   :  { %4735 = vmatprep.subr.bf16.mxu0 %v5112_v58  ;;  %v1836_v13 = vrot.slane %v5420_v44, %v1835_v12 }
 0x319   :  { %4718 = vmatpush3.bf16.msra.mxu1 %v5101_v59 }
 0x31a   :  { %4719 = vmatprep.subr.bf16.mxu1 %v5102_v61 }
 0x31b   :  { %4736 = vmatpush3.bf16.msra.mxu0 %v5113_v15 }
 0x31c   :  { %4737 = vmatprep.subr.bf16.mxu0 %v5114_v16 }
 0x31d   :  { %4720 = vmatpush3.bf16.msra.mxu1 %v5103_v17 }
 0x31e   :  { %4721 = vmatprep.subr.bf16.mxu1 %v5104_v18 }
 0x31f   :  { %4738 = vmatpush3.bf16.msra.mxu0 %v5115_v19 }
 0x320   :  { %4739 = vmatprep.subr.bf16.mxu0 %v5116_v20 }
 0x321   :  { %4722 = vmatpush3.bf16.msra.mxu1 %v5105_v21 }
 0x322   :  { %4723 = vmatprep.subr.bf16.mxu1 %v5106_v22 }
 0x323   :  { %4740 = vmatpush3.bf16.msra.mxu0 %v5117_v25 }
 0x324   :  { %4741 = vmatprep.subr.bf16.mxu0 %v5118_v26 }
 0x325   :  { %4724 = vmatpush3.bf16.msra.mxu1 %v5107_v27 }
 0x326   :  { %4725 = vmatprep.subr.bf16.mxu1 %v5108_v28 }
 0x327   :  { %4742 = vmatpush3.bf16.msra.mxu0 %v5119_v29  ;;  %v1839_v29 = vsub.s32 6, %v5326_v6 }
 0x328   :  { %4743 = vmatprep.subr.bf16.mxu0 %v5120_v31  ;;  %v1843_v31 = vsub.s32 7, %v5326_v6 }
 0x329   :  { %4726 = vmatpush3.bf16.msra.mxu1 %v5109_v32  ;;  %v1840_v32 = vrot.slane %v5420_v44, %v1839_v29 }
 0x32a   :  { %4755 = vmatprep.subr.bf16.mxu1 %v5126_v34  ;;  %v1844_v34 = vrot.slane %v5420_v44, %v1843_v31  ;;  %v4624_v44 = vld [vmem:[%s5461_s8] ss:$0 sm:$0xff]  ;;  %s5222_s8 = scalar_lea.vmem %s4164_s17, 128 }
 0x32b   :  { %4744 = vmatpush3.bf16.msra.mxu0 %v5121_v35  ;;  %p5223_p6 = scmp.ne.s32.totalorder %s4164_s17, %s5222_s8  ;;  %p5228_p8 = scmp.lt.s32.totalorder %s5222_s8, %s5222_s8 }
 0x32c   :  { %4745 = vmatprep.subr.bf16.mxu0 %v5122_v38 }
 0x32d   :  { %p5229_p9 = por %p5228_p8, %p5227_p7 }
 0x32f   :  { %4746 = vmatpush3.bf16.msra.mxu0 %v5123_v39  ;;  %p5230_p10 = pnand %p5229_p9, %p5223_p6 }
 0x330   :  { %4747 = vmatprep.subr.bf16.mxu0 %v5124_v40 }
 0x333   :  { %4748 = vmatpush3.bf16.msra.mxu0 %v5125_v23 }
 0x34c   :  { %v3290_v41 = vpop.f32.mrf.mxu1 }
 0x34d   :  { %v3291_v37 = vadd.f32 %v3290_v41, %v3250_v2  ;;  %v3331_v42 = vpop.f32.mrf.mxu0 }
 0x34e   :  { %v3292_v51 = vpop.f32.mrf.mxu1  ;;  %v3332_v14 = vadd.f32 %v3331_v42, %v1832_v36 }
 0x34f   :  { %v3293_v43 = vadd.f32 %v3292_v51, %v3252_v24  ;;  %v3333_v45 = vpop.f32.mrf.mxu0  ;;  %v3463_v46 = vmax.f32 %v3291_v37, 0.0 }
 0x350   :  { %v3294_v47 = vpop.f32.mrf.mxu1  ;;  %v3334_v59 = vadd.f32 %v3333_v45, %v1836_v13 }
 0x351   :  { %v3464_v48 = vmax.f32 %v3293_v43, 0.0  ;;  %v3335_v49 = vpop.f32.mrf.mxu0  ;;  %v3471_v56 = vpack.c.bf16 %v3463_v46, %v3463_v46 }
 0x352   :  { %v3295_v50 = vpop.f32.mrf.mxu1 }
 0x353   :  { %v3472_v53 = vpack.c.bf16 %v3464_v48, %v3464_v48  ;;  %v3336_v8 = vpop.f32.mrf.mxu0 }
 0x355   :  { %4068 = vmatprep.mubr.bf16.mxu1 %v3472_v53 }
 0x356   :  { %4069 = vmatmul.mubr.bf16.vlgmr.msra.gmra.mxu1 %v3471_v56 }
 0x357   :  { %4756 = vmatpush3.bf16.msra.mxu1 %v5127_v54 }
 0x358   :  { %4757 = vmatprep.subr.bf16.mxu1 %v5128_v11 }
 0x35b   :  { %4758 = vmatpush3.bf16.msra.mxu1 %v5129_v55 }
 0x35c   :  { %4759 = vmatprep.subr.bf16.mxu1 %v5130_v57 }
 0x35f   :  { %4760 = vmatpush3.bf16.msra.mxu1 %v5131_v60 }
 0x360   :  { %4761 = vmatprep.subr.bf16.mxu1 %v5132_v7 }
 0x363   :  { %4762 = vmatpush3.bf16.msra.mxu1 %v5133_v63 }
 0x364   :  { %4763 = vmatprep.subr.bf16.mxu1 %v5134_v10 }
 0x367   :  { %4764 = vmatpush3.bf16.msra.mxu1 %v5135_v0 }
 0x368   :  { %4765 = vmatprep.subr.bf16.mxu1 %v5136_v1 }
 0x36b   :  { %4766 = vmatpush3.bf16.msra.mxu1 %v5137_v3 }
 0x36c   :  { %4767 = vmatprep.subr.bf16.mxu1 %v5138_v4 }
 0x36f   :  { %4768 = vmatpush3.bf16.msra.mxu1 %v5139_v33 }
 0x370   :  { %4769 = vmatprep.subr.bf16.mxu1 %v5140_v52 }
 0x373   :  { %4770 = vmatpush3.bf16.msra.mxu1 %v5141_v5 }
 0x38c   :  { %v3372_v58 = vpop.f32.mrf.mxu1 }
 0x38d   :  { %v3373_v61 = vadd.f32 %v3372_v58, %v3332_v14  ;;  %v3413_v15 = vpop.f32.mrf.mxu0 }
 0x38e   :  { %v3374_v16 = vpop.f32.mrf.mxu1  ;;  %v3414_v35 = vadd.f32 %v3413_v15, %v1840_v32 }
 0x38f   :  { %v3375_v17 = vadd.f32 %v3374_v16, %v3334_v59  ;;  %v3415_v18 = vpop.f32.mrf.mxu0  ;;  %v3465_v19 = vmax.f32 %v3373_v61, 0.0 }
 0x390   :  { %v3376_v20 = vpop.f32.mrf.mxu1  ;;  %v3416_v39 = vadd.f32 %v3415_v18, %v1844_v34 }
 0x391   :  { %v3466_v21 = vmax.f32 %v3375_v17, 0.0  ;;  %v3417_v22 = vpop.f32.mrf.mxu0  ;;  %v3473_v28 = vpack.c.bf16 %v3465_v19, %v3465_v19 }
 0x392   :  { %v3377_v25 = vpop.f32.mrf.mxu1 }
 0x393   :  { %v3474_v26 = vpack.c.bf16 %v3466_v21, %v3466_v21  ;;  %v3418_v27 = vpop.f32.mrf.mxu0 }
 0x395   :  { %4108 = vmatprep.mubr.bf16.mxu0 %v3474_v26 }
 0x396   :  { %4109 = vmatmul.mubr.bf16.vlgmr.msra.gmra.mxu0 %v3473_v28 }
 0x3cc   :  { %v3454_v38 = vpop.f32.mrf.mxu1 }
 0x3cd   :  { %v3455_v40 = vadd.f32 %v3454_v38, %v3414_v35 }
 0x3ce   :  { %v3456_v23 = vpop.f32.mrf.mxu1 }
 0x3cf   :  { %v3457_v62 = vadd.f32 %v3456_v23, %v3416_v39  ;;  %v3467_v30 = vmax.f32 %v3455_v40, 0.0 }
 0x3d0   :  { %v3458_v2 = vpop.f32.mrf.mxu1 }
 0x3d1   :  { %v3468_v41 = vmax.f32 %v3457_v62, 0.0  ;;  %v3475_v42 = vpack.c.bf16 %v3467_v30, %v3467_v30 }
 0x3d2   :  { %v3459_v24 = vpop.f32.mrf.mxu1 }
 0x3d3   :  { %v3476_v37 = vpack.c.bf16 %v3468_v41, %v3468_v41 }
 0x3d5   :  { %4148 = vmatprep.mubr.bf16.mxu1 %v3476_v37 }
 0x3d6   :  { %4149 = vmatmul.mubr.bf16.vlgmr.msra.gmra.mxu1 %v3475_v42  ;;  %v4705_v51 = vpop.f32.mrf.mxu0 }
 0x3d8   :  { %v4706_v6 = vpop.f32.mrf.mxu0 }
 0x3d9   :  { %v4707_v43 = vadd.f32 %v4706_v6, %v4705_v51 }
 0x3da   :  { %v4708_v45 = vpop.f32.mrf.mxu0 }
 0x3db   :  { %v4031_v49 = vadd.f32 %v4707_v43, %v4624_v44 }
 0x3dc   :  { %v4709_v46 = vpop.f32.mrf.mxu0 }
 0x416   :  { %v4727_v47 = vpop.f32.mrf.mxu1 }
 0x418   :  { %v4728_v48 = vpop.f32.mrf.mxu1 }
 0x419   :  { %v4729_v50 = vadd.f32 %v4728_v48, %v4727_v47 }
 0x41a   :  { %v4730_v53 = vpop.f32.mrf.mxu1 }
 0x41b   :  { %v4071_v8 = vadd.f32 %v4729_v50, %v4031_v49 }
 0x41c   :  { %v4731_v54 = vpop.f32.mrf.mxu1 }
 0x456   :  { %v4749_v56 = vpop.f32.mrf.mxu0 }
 0x458   :  { %v4750_v11 = vpop.f32.mrf.mxu0 }
 0x459   :  { %v4751_v55 = vadd.f32 %v4750_v11, %v4749_v56 }
 0x45a   :  { %v4752_v57 = vpop.f32.mrf.mxu0 }
 0x45b   :  { %v4111_v60 = vadd.f32 %v4751_v55, %v4071_v8 }
 0x45c   :  { %v4753_v7 = vpop.f32.mrf.mxu0 }
 0x496   :  { %v4771_v63 = vpop.f32.mrf.mxu1 }
 0x498   :  { %v4772_v10 = vpop.f32.mrf.mxu1 }
 0x499   :  { %v4773_v0 = vadd.f32 %v4772_v10, %v4771_v63 }
 0x49a   :  { %v4774_v1 = vpop.f32.mrf.mxu1 }
 0x49b   :  { %v4151_v3 = vadd.f32 %v4773_v0, %v4111_v60 }
 0x49c   :  { %v4775_v4 = vpop.f32.mrf.mxu1 }
 0x49d   :  { %4156 = vst [vmem:[#allocation10] sm:$0xff] %v4151_v3 }
 0x49e   :  { %5233 = shalt.err (!%p5230_p10)
}
 0x49f   :  { %4166 = dma.vmem_to_hbm [thread:$0]  %s4164_s17, 128, %s5462_s9, [#allocation4]  }
 0x4a0   :  { %5248 = dma.done.wait [#allocation4], 128  }
 0x4a1   :  { %5249 = vsyncadd [#allocation4], 4294967168 }
 0x4a2   :  { %4170 = vsyncpa [#allocation3], 1 }
 0x4a3   :  { %4171 = vsyncpa [#allocation6], 1 }
 0x4a4   :  { %4172 = vsyncpa [#allocation9], 1 }
 0x4a5   :  { %4173 = vsyncpa [#allocation4], 1 }

</bundles_post_ra>
